<compile_context>
chip_gen: v7x
topology: tpu7x:2x2x1
jax: 0.10.0
libtpu: 0.0.40
codegen_flags: <defaults>
</compile_context>

<pallas_src>
import functools

import jax
import jax.numpy as jnp
from jax.experimental import pallas as pl
from jax.experimental.pallas import tpu as pltpu

MATMUL_DTYPE = jnp.bfloat16   # MXU operand dtype (accumulation stays f32)
LANE = 128
SUBLANE = 8


def _round_up(x, m):
    return (x + m - 1) // m * m


# ---------------------------------------------------------------------------
# Kernel 1: fully fused prediction path
#   feature-proj (1x1 conv) -> conv1x1 -> LeakyReLU -> conv1x1 -> sigmoid epilogue
# ---------------------------------------------------------------------------

def _fused_head_kernel(x_ref, wf_ref, bf_ref, w1_ref, b1_ref, w2_ref, b2_ref,
                       cmask_ref, xymask_ref, o_ref):
    # Backbone-stub 1x1 projection (no activation).  Stays in registers / VMEM.
    feat = jnp.dot(x_ref[...], wf_ref[...], preferred_element_type=jnp.float32)
    feat = feat + bf_ref[...]
    # Head conv1 + LeakyReLU.  TODO(synk): nn.Dropout(p=0.3) omitted (identity / eval mode).
    h = jnp.dot(feat.astype(w1_ref.dtype), w1_ref[...], preferred_element_type=jnp.float32)
    h = h + b1_ref[...]
    h = jnp.where(h >= 0.0, h, 0.01 * h)          # nn.LeakyReLU() default slope
    # Head conv2 — hidden activation never written back to HBM.
    out = jnp.dot(h.astype(w2_ref.dtype), w2_ref[...], preferred_element_type=jnp.float32)
    out = out + b2_ref[...]
    # Fused epilogue: sigmoid on confidence channels, sigmoid-0.5 on tx/ty offset channels,
    # identity elsewhere (tw/th, class scores).  Masks are disjoint {0,1}; EUP work hides
    # under the MXU.
    sig = jax.nn.sigmoid(out)
    cm = cmask_ref[...]
    xm = xymask_ref[...]
    o_ref[...] = (out * (1.0 - cm - xm) + cm * sig + xm * (sig - 0.5)).astype(o_ref.dtype)


def detector_head_forward(params, pixel_rows, B, H, W, num_anchors, num_classes,
                          pos_anchor_idx=None, neg_anchor_idx=None, tile_p=128):
    """Fused backbone-projection + PredictionNetwork forward on channels-last pixel rows."""
    A, C = num_anchors, num_classes
    P, Cin = pixel_rows.shape
    Dfeat = params["w_feat"].shape[0]              # backbone output channels ("in_dim")
    Hdim = params["w1"].shape[0]                   # hidden_dim
    Cout = params["w2"].shape[0]                   # 5*A + C

    Cin_p = _round_up(Cin, SUBLANE)
    D_p = _round_up(Dfeat, LANE)
    H_p = _round_up(Hdim, LANE)
    Cout_p = _round_up(Cout, LANE)
    P_p = _round_up(P, tile_p)

    x_p = jnp.zeros((P_p, Cin_p), MATMUL_DTYPE).at[:P, :Cin].set(
        pixel_rows.astype(MATMUL_DTYPE))
    wf_p = jnp.zeros((Cin_p, D_p), MATMUL_DTYPE).at[:Cin, :Dfeat].set(
        params["w_feat"].reshape(Dfeat, Cin).T.astype(MATMUL_DTYPE))
    bf_p = jnp.zeros((1, D_p), jnp.float32).at[0, :Dfeat].set(
        params["b_feat"].astype(jnp.float32))
    w1_p = jnp.zeros((D_p, H_p), MATMUL_DTYPE).at[:Dfeat, :Hdim].set(
        params["w1"].reshape(Hdim, Dfeat).T.astype(MATMUL_DTYPE))
    b1_p = jnp.zeros((1, H_p), jnp.float32).at[0, :Hdim].set(params["b1"].astype(jnp.float32))
    w2_p = jnp.zeros((H_p, Cout_p), MATMUL_DTYPE).at[:Hdim, :Cout].set(
        params["w2"].reshape(Cout, Hdim).T.astype(MATMUL_DTYPE))
    b2_p = jnp.zeros((1, Cout_p), jnp.float32).at[0, :Cout].set(params["b2"].astype(jnp.float32))

    ch = jnp.arange(Cout_p)
    in_head = ch < 5 * A
    conf_mask = (in_head & (ch % 5 == 0)).astype(jnp.float32)[None, :]
    xy_mask = (in_head & ((ch % 5 == 1) | (ch % 5 == 2))).astype(jnp.float32)[None, :]

    out_rows = pl.pallas_call(
        _fused_head_kernel,
        out_shape=jax.ShapeDtypeStruct((P_p, Cout_p), jnp.float32),
        grid=(P_p // tile_p,),
        in_specs=[
            pl.BlockSpec((tile_p, Cin_p), lambda i: (i, 0)),
            pl.BlockSpec((Cin_p, D_p), lambda i: (0, 0)),
            pl.BlockSpec((1, D_p), lambda i: (0, 0)),
            pl.BlockSpec((D_p, H_p), lambda i: (0, 0)),
            pl.BlockSpec((1, H_p), lambda i: (0, 0)),
            pl.BlockSpec((H_p, Cout_p), lambda i: (0, 0)),
            pl.BlockSpec((1, Cout_p), lambda i: (0, 0)),
            pl.BlockSpec((1, Cout_p), lambda i: (0, 0)),
            pl.BlockSpec((1, Cout_p), lambda i: (0, 0)),
        ],
        out_specs=pl.BlockSpec((tile_p, Cout_p), lambda i: (i, 0)),
        compiler_params=pltpu.CompilerParams(
            dimension_semantics=("parallel",),
            vmem_limit_bytes=64 * 1024 * 1024),
    )(x_p, wf_p, bf_p, w1_p, b1_p, w2_p, b2_p, conf_mask, xy_mask)

    HW = H * W
    if pos_anchor_idx is not None and neg_anchor_idx is not None:
        # Training: extract positive / negative anchor predictions (plain JAX gathers).
        def split(idx):                             # flat (B,A,H,W) anchor idx -> (pixel row, a)
            b = idx // (A * HW)
            r = idx % (A * HW)
            return b * HW + r % HW, r // HW
        p_pos, a_pos = split(pos_anchor_idx)
        p_neg, a_neg = split(neg_anchor_idx)
        conf_scores = jnp.concatenate(
            [out_rows[p_pos, 5 * a_pos][:, None],
             out_rows[p_neg, 5 * a_neg][:, None]], axis=0)                      # (2M, 1)
        off_ch = (5 * a_pos)[:, None] + jnp.arange(1, 5)[None, :]
        offsets = out_rows[p_pos[:, None], off_ch]                               # (M, 4)
        class_scores = out_rows[p_pos][:, 5 * A:5 * A + C]                       # (M, C)
        return conf_scores, offsets, class_scores

    # Inference layout (not exercised in main): (B,A,H,W), (B,A,4,H,W), (B,C,H,W)
    g = out_rows[:B * HW, :5 * A + C].reshape(B, H, W, 5 * A + C)
    conf = jnp.transpose(g[..., 0:5 * A:5], (0, 3, 1, 2))
    off = jnp.transpose(g[..., :5 * A].reshape(B, H, W, A, 5)[..., 1:5], (0, 3, 4, 1, 2))
    cls = jnp.transpose(g[..., 5 * A:], (0, 3, 1, 2))
    return conf, off, cls


# ---------------------------------------------------------------------------
# Kernel 2: fused GenerateAnchor + IoU + per-anchor max/argmax over GT boxes
#   (anchors and the full (B,K,N) IoU tensor are never materialized in HBM)
# ---------------------------------------------------------------------------

def _anchor_iou_argmax_kernel(bb_ref, anc_ref, ctr_ref, max_ref, arg_ref, *, B, N):
    aw = anc_ref[:, 0:1]                         # (A, 1) anchor widths
    ah = anc_ref[:, 1:2]                         # (A, 1) anchor heights
    cx = ctr_ref[0:1, :]                         # (1, HWp) cell-center x
    cy = ctr_ref[1:2, :]                         # (1, HWp) cell-center y
    x = cx - 0.5 * aw                            # (A, HWp) x_tl   -- GenerateAnchor, fused
    y = cy - 0.5 * ah                            # (A, HWp) y_tl
    X = cx + 0.5 * aw                            # (A, HWp) x_br
    Y = cy + 0.5 * ah                            # (A, HWp) y_br
    for b in range(B):                           # tiny static unroll: B*N lane-dense IoU maps
        best = None
        best_n = None
        for n in range(N):
            row = b * N + n
            x_ = bb_ref[row, 0]                  # GT box scalars from SMEM
            y_ = bb_ref[row, 1]
            X_ = bb_ref[row, 2]
            Y_ = bb_ref[row, 3]
            w = jnp.minimum(X - x_, X_ - x)
            h = jnp.minimum(Y - y_, Y_ - y)
            Wm = jnp.maximum(X - x_, X_ - x)
            Hm = jnp.maximum(Y - y_, Y_ - y)
            w = jnp.where(X - x_ < 0.0, 0.0, w)
            w = jnp.where(X_ - x < 0.0, 0.0, w)
            iou = (w * h) / (Wm * Hm)            # exact reference formula (incl. its quirks)
            if n == 0:
                best = iou
                best_n = jnp.zeros(iou.shape, jnp.int32)
            else:
                upd = iou > best                 # strict > keeps first max (argmax tie-break)
                best = jnp.where(upd, iou, best)
                best_n = jnp.where(upd, n, best_n)
        max_ref[b] = best
        arg_ref[b] = best_n


def anchor_iou_match(anc, bboxes, B, H, W):
    """Fused GenerateAnchor + IoU + max/argmax over GT boxes.

    Returns (max_iou, gt_idx), each of shape (B, K) with K = a*H*W + h*W + w
    (matching the reference's flattened anchor index order).
    """
    A = anc.shape[0]
    N = bboxes.shape[1]
    HW = H * W
    HWp = _round_up(HW, LANE)
    # Cell centers, flattened in h-major order (k = h*W + w), matching the reference K order.
    cx = jnp.tile(jnp.arange(W, dtype=jnp.float32) + 0.5, H)
    cy = jnp.repeat(jnp.arange(H, dtype=jnp.float32) + 0.5, W)
    ctr = jnp.zeros((2, HWp), jnp.float32).at[0, :HW].set(cx).at[1, :HW].set(cy)
    bb = bboxes[:, :, :4].astype(jnp.float32).reshape(B * N, 4)

    max_iou, gt_idx = pl.pallas_call(
        functools.partial(_anchor_iou_argmax_kernel, B=B, N=N),
        out_shape=(jax.ShapeDtypeStruct((B, A, HWp), jnp.float32),
                   jax.ShapeDtypeStruct((B, A, HWp), jnp.int32)),
        grid=(1,),
        in_specs=[
            pl.BlockSpec(memory_space=pltpu.MemorySpace.SMEM),   # GT boxes -> scalar reads
            pl.BlockSpec((A, 2), lambda i: (0, 0)),
            pl.BlockSpec((2, HWp), lambda i: (0, 0)),
        ],
        out_specs=[pl.BlockSpec((B, A, HWp), lambda i: (0, 0, 0)),
                   pl.BlockSpec((B, A, HWp), lambda i: (0, 0, 0))],
        compiler_params=pltpu.CompilerParams(dimension_semantics=("arbitrary",)),
    )(bb, anc.astype(jnp.float32), ctr)

    # Drop lane padding; flatten to the reference K order.
    max_iou = max_iou[:, :, :HW].reshape(B, A * HW)
    gt_idx = gt_idx[:, :, :HW].reshape(B, A * HW)
    return max_iou, gt_idx


# ---------------------------------------------------------------------------
# Losses (tiny scalar reductions: plain jnp, fused by XLA — no pallas_call overhead)
# ---------------------------------------------------------------------------

def conf_score_regression(conf_scores, GT_conf_scores):
    # Follows the provided ConfScoreRegression exactly: targets are ones for positives,
    # zeros for negatives, mean over 2M.
    gt = jnp.concatenate(
        [jnp.ones_like(GT_conf_scores), jnp.zeros_like(GT_conf_scores)], axis=0).reshape(-1, 1)
    return jnp.sum((conf_scores - gt) ** 2) / gt.shape[0]


def bbox_regression(offsets, GT_offsets):
    return jnp.sum((offsets - GT_offsets) ** 2) / GT_offsets.shape[0]


def object_classification(class_scores, GT_class, batch_size, anc_per_img, activated_anc_ind):
    # TODO(synk): ObjectClassification body was not provided in the spec; standard A5
    # cross-entropy over positive anchors, averaged over the batch, is used instead.
    log_probs = jax.nn.log_softmax(class_scores, axis=-1)
    nll = -jnp.take_along_axis(log_probs, GT_class[:, None].astype(jnp.int32), axis=-1)[:, 0]
    return jnp.sum(nll) / batch_size


# ---------------------------------------------------------------------------
# Glue (plain JAX): grid, anchor matching, feature extractor stub, full forward
# ---------------------------------------------------------------------------

def generate_grid(batch_size, w_amap, h_amap):
    w_range = jnp.arange(w_amap, dtype=jnp.float32) + 0.5
    h_range = jnp.arange(h_amap, dtype=jnp.float32) + 0.5
    wg = jnp.tile(w_range[None, :], (h_amap, 1))
    hg = jnp.tile(h_range[:, None], (1, w_amap))
    grid = jnp.stack([wg, hg], axis=-1)
    return jnp.broadcast_to(grid[None], (batch_size, h_amap, w_amap, 2))


def reference_on_activated_anchors(bboxes, grid, max_iou, gt_idx, anc_list, A, H, W, M=8):
    # TODO(synk): ReferenceOnActivatedAnchors was not provided; its dynamic-length nonzero()
    # matching is replaced by a deterministic fixed-M top-k / bottom-k IoU matching with
    # YOLO-style GT offsets.
    B, K = max_iou.shape
    HW = H * W
    flat_iou = max_iou.reshape(-1)                       # (B*K,)
    _, pos_idx = jax.lax.top_k(flat_iou, M)
    _, neg_idx = jax.lax.top_k(-flat_iou, M)
    pos_idx = pos_idx.astype(jnp.int32)
    neg_idx = neg_idx.astype(jnp.int32)

    GT_conf_scores = flat_iou[pos_idx]                   # (M,)
    b_idx = pos_idx // K
    k_idx = pos_idx % K
    a_idx = k_idx // HW
    hw = k_idx % HW
    h_idx = hw // W
    w_idx = hw % W
    n_idx = gt_idx.reshape(-1)[pos_idx]

    gt_box = bboxes[b_idx, n_idx]                        # (M, 5)
    GT_class = gt_box[:, 4].astype(jnp.int32)
    bc = (gt_box[:, 0:2] + gt_box[:, 2:4]) * 0.5
    bwh = gt_box[:, 2:4] - gt_box[:, 0:2]
    ac = grid[b_idx, h_idx, w_idx]                       # (M, 2)
    awh = anc_list[a_idx]                                # (M, 2)
    GT_offsets = jnp.concatenate([bc - ac, jnp.log(bwh / awh)], axis=-1)   # (M, 4)
    return pos_idx, neg_idx, GT_conf_scores, GT_offsets, GT_class


def feature_extractor_rows(images):
    # TODO(synk): the real FeatureExtractor is a torchvision MobileNetV2 backbone (not
    # provided); replaced by avg-pool to 7x7.  Its 1x1 projection to in_dim is fused into the
    # prediction-head Pallas kernel.  The single NCHW -> channels-last layout conversion of
    # the whole model happens here.
    B, C, Himg, Wimg = images.shape
    fh, fw = Himg // 7, Wimg // 7
    pooled = images.reshape(B, C, 7, fh, 7, fw).mean(axis=(3, 5))          # (B, 3, 7, 7)
    rows = jnp.transpose(pooled, (0, 2, 3, 1)).reshape(B * 49, C)          # pixel rows
    return rows, (B, 7, 7)


def single_stage_detector_forward(params, anchor_list, images, bboxes, M=8, num_classes=20):
    w_conf = w_reg = w_cls = 1.0
    pixel_rows, (B, H, W) = feature_extractor_rows(images)
    A = anchor_list.shape[0]
    max_iou, gt_idx = anchor_iou_match(anchor_list, bboxes, B, H, W)       # anchors fused away
    grid = generate_grid(B, W, H)
    (pos_idx, neg_idx, GT_conf_scores, GT_offsets, GT_class) = reference_on_activated_anchors(
        bboxes, grid, max_iou, gt_idx, anchor_list, A, H, W, M=M)
    conf_scores, offsets, class_scores = detector_head_forward(
        params, pixel_rows, B, H, W, A, num_classes,
        pos_anchor_idx=pos_idx, neg_anchor_idx=neg_idx)
    conf_loss = conf_score_regression(conf_scores, GT_conf_scores)
    reg_loss = bbox_regression(offsets, GT_offsets)
    anc_per_img = A * H * W
    cls_loss = object_classification(class_scores, GT_class, B, anc_per_img, pos_idx)
    return w_conf * conf_loss + w_reg * reg_loss + w_cls * cls_loss


# ---------------------------------------------------------------------------
# Main
# ---------------------------------------------------------------------------

if __name__ == "__main__":
    key = jax.random.PRNGKey(0)
    k1, k2, k3, k4, k5, k6, k7 = jax.random.split(key, 7)

    B, N = 2, 4
    in_dim, hidden, A, C = 64, 32, 9, 20   # real module uses in_dim=1280, hidden=128

    anchor_list = jnp.array(
        [[1.0, 1], [2, 2], [3, 3], [4, 4], [5, 5], [2, 3], [3, 2], [3, 5], [5, 3]],
        dtype=jnp.float32)

    params = {
        "w_feat": 0.1 * jax.random.normal(k1, (in_dim, 3, 1, 1), jnp.float32),
        "b_feat": 0.05 * jax.random.normal(k2, (in_dim,), jnp.float32),
        "w1": 0.1 * jax.random.normal(k3, (hidden, in_dim, 1, 1), jnp.float32),
        "b1": 0.05 * jax.random.normal(k4, (hidden,), jnp.float32),
        "w2": 0.1 * jax.random.normal(k5, (5 * A + C, hidden, 1, 1), jnp.float32),
        "b2": 0.05 * jax.random.normal(k6, (5 * A + C,), jnp.float32),
    }

    images = jax.random.normal(k7, (B, 3, 28, 28), jnp.float32)
    bboxes = jnp.array(
        [[[1.0, 1.0, 3.0, 3.5, 2.0],
          [2.5, 2.0, 5.0, 4.0, 7.0],
          [0.5, 3.0, 2.5, 6.0, 1.0],
          [4.0, 4.0, 6.5, 6.5, 10.0]],
         [[0.5, 0.5, 2.0, 2.0, 3.0],
          [3.0, 1.0, 5.5, 3.0, 5.0],
          [1.0, 4.0, 3.0, 6.5, 0.0],
          [4.5, 2.5, 6.5, 5.5, 12.0]]], dtype=jnp.float32)

    forward = jax.jit(functools.partial(single_stage_detector_forward, M=8, num_classes=C))
    total_loss = forward(params, anchor_list, images, bboxes)
    total_loss = jax.block_until_ready(total_loss)
    assert total_loss.shape == () and bool(jnp.isfinite(total_loss))
    print("KERNEL_OK")
</pallas_src>

<mosaic_0001>
module attributes {stable_mosaic.version = 11 : i64} {
  func.func @_fused_head_kernel(%arg0: i32, %arg1: memref<128x8xbf16, #tpu.memory_space<vmem>>, %arg2: memref<8x128xbf16, #tpu.memory_space<vmem>>, %arg3: memref<1x128xf32, #tpu.memory_space<vmem>>, %arg4: memref<128x128xbf16, #tpu.memory_space<vmem>>, %arg5: memref<1x128xf32, #tpu.memory_space<vmem>>, %arg6: memref<128x128xbf16, #tpu.memory_space<vmem>>, %arg7: memref<1x128xf32, #tpu.memory_space<vmem>>, %arg8: memref<1x128xf32, #tpu.memory_space<vmem>>, %arg9: memref<1x128xf32, #tpu.memory_space<vmem>>, %arg10: memref<128x128xf32, #tpu.memory_space<vmem>>) attributes {dimension_semantics = [#tpu.dimension_semantics<parallel>], iteration_bounds = array<i64: 1>, scalar_prefetch = 0 : i64, scratch_operands = 0 : i64, tpu.core_type = #tpu.core_type<tc>, window_params = [{transform_indices = @transform_0, window_bounds = array<i64: 128, 8>}, {pipeline_mode = #tpu.pipeline_mode<synchronous>, transform_indices = @transform_1, window_bounds = array<i64: 8, 128>}, {pipeline_mode = #tpu.pipeline_mode<synchronous>, transform_indices = @transform_2, window_bounds = array<i64: 1, 128>}, {pipeline_mode = #tpu.pipeline_mode<synchronous>, transform_indices = @transform_3, window_bounds = array<i64: 128, 128>}, {pipeline_mode = #tpu.pipeline_mode<synchronous>, transform_indices = @transform_4, window_bounds = array<i64: 1, 128>}, {pipeline_mode = #tpu.pipeline_mode<synchronous>, transform_indices = @transform_5, window_bounds = array<i64: 128, 128>}, {pipeline_mode = #tpu.pipeline_mode<synchronous>, transform_indices = @transform_6, window_bounds = array<i64: 1, 128>}, {pipeline_mode = #tpu.pipeline_mode<synchronous>, transform_indices = @transform_7, window_bounds = array<i64: 1, 128>}, {pipeline_mode = #tpu.pipeline_mode<synchronous>, transform_indices = @transform_8, window_bounds = array<i64: 1, 128>}, {transform_indices = @transform_9, window_bounds = array<i64: 128, 128>}]} {
    %c0 = arith.constant 0 : index
    %c0_0 = arith.constant 0 : index
    %0 = vector.load %arg1[%c0, %c0_0] : memref<128x8xbf16, #tpu.memory_space<vmem>>, vector<128x8xbf16>
    %c0_1 = arith.constant 0 : index
    %c0_2 = arith.constant 0 : index
    %1 = vector.load %arg2[%c0_1, %c0_2] : memref<8x128xbf16, #tpu.memory_space<vmem>>, vector<8x128xbf16>
    %cst = arith.constant dense<0.000000e+00> : vector<128x128xf32>
    %2 = tpu.matmul %0, %1, %cst {dimension_numbers = #tpu.dot_dimension_numbers<[1], [0], [0], [1], [0, 0, 1, 1], [], []>} : vector<128x8xbf16>, vector<8x128xbf16>, vector<128x128xf32> -> vector<128x128xf32>
    %c0_3 = arith.constant 0 : index
    %c0_4 = arith.constant 0 : index
    %3 = vector.load %arg3[%c0_3, %c0_4] : memref<1x128xf32, #tpu.memory_space<vmem>>, vector<1x128xf32>
    %4 = vector.broadcast %3 : vector<1x128xf32> to vector<128x128xf32>
    %5 = arith.addf %2, %4 : vector<128x128xf32>
    %6 = arith.truncf %5 : vector<128x128xf32> to vector<128x128xbf16>
    %c0_5 = arith.constant 0 : index
    %c0_6 = arith.constant 0 : index
    %7 = vector.load %arg4[%c0_5, %c0_6] : memref<128x128xbf16, #tpu.memory_space<vmem>>, vector<128x128xbf16>
    %cst_7 = arith.constant dense<0.000000e+00> : vector<128x128xf32>
    %8 = tpu.matmul %6, %7, %cst_7 {dimension_numbers = #tpu.dot_dimension_numbers<[1], [0], [0], [1], [0, 0, 1, 1], [], []>} : vector<128x128xbf16>, vector<128x128xbf16>, vector<128x128xf32> -> vector<128x128xf32>
    %c0_8 = arith.constant 0 : index
    %c0_9 = arith.constant 0 : index
    %9 = vector.load %arg5[%c0_8, %c0_9] : memref<1x128xf32, #tpu.memory_space<vmem>>, vector<1x128xf32>
    %10 = vector.broadcast %9 : vector<1x128xf32> to vector<128x128xf32>
    %11 = arith.addf %8, %10 : vector<128x128xf32>
    %cst_10 = arith.constant 0.000000e+00 : f32
    %12 = vector.broadcast %cst_10 : f32 to vector<128x128xf32>
    %13 = arith.cmpf oge, %11, %12 : vector<128x128xf32>
    %cst_11 = arith.constant 0.00999999977 : f32
    %14 = vector.broadcast %cst_11 : f32 to vector<128x128xf32>
    %15 = arith.mulf %14, %11 : vector<128x128xf32>
    %16 = arith.select %13, %11, %15 : vector<128x128xi1>, vector<128x128xf32>
    %17 = arith.truncf %16 : vector<128x128xf32> to vector<128x128xbf16>
    %c0_12 = arith.constant 0 : index
    %c0_13 = arith.constant 0 : index
    %18 = vector.load %arg6[%c0_12, %c0_13] : memref<128x128xbf16, #tpu.memory_space<vmem>>, vector<128x128xbf16>
    %cst_14 = arith.constant dense<0.000000e+00> : vector<128x128xf32>
    %19 = tpu.matmul %17, %18, %cst_14 {dimension_numbers = #tpu.dot_dimension_numbers<[1], [0], [0], [1], [0, 0, 1, 1], [], []>} : vector<128x128xbf16>, vector<128x128xbf16>, vector<128x128xf32> -> vector<128x128xf32>
    %c0_15 = arith.constant 0 : index
    %c0_16 = arith.constant 0 : index
    %20 = vector.load %arg7[%c0_15, %c0_16] : memref<1x128xf32, #tpu.memory_space<vmem>>, vector<1x128xf32>
    %21 = vector.broadcast %20 : vector<1x128xf32> to vector<128x128xf32>
    %22 = arith.addf %19, %21 : vector<128x128xf32>
    %23 = arith.negf %22 : vector<128x128xf32>
    %24 = math.exp %23 : vector<128x128xf32>
    %cst_17 = arith.constant 1.000000e+00 : f32
    %25 = vector.broadcast %cst_17 : f32 to vector<128x128xf32>
    %26 = arith.addf %25, %24 : vector<128x128xf32>
    %27 = arith.divf %25, %26 : vector<128x128xf32>
    %c0_18 = arith.constant 0 : index
    %c0_19 = arith.constant 0 : index
    %28 = vector.load %arg8[%c0_18, %c0_19] : memref<1x128xf32, #tpu.memory_space<vmem>>, vector<1x128xf32>
    %c0_20 = arith.constant 0 : index
    %c0_21 = arith.constant 0 : index
    %29 = vector.load %arg9[%c0_20, %c0_21] : memref<1x128xf32, #tpu.memory_space<vmem>>, vector<1x128xf32>
    %cst_22 = arith.constant 1.000000e+00 : f32
    %30 = vector.broadcast %cst_22 : f32 to vector<1x128xf32>
    %31 = arith.subf %30, %28 : vector<1x128xf32>
    %32 = arith.subf %31, %29 : vector<1x128xf32>
    %33 = vector.broadcast %32 : vector<1x128xf32> to vector<128x128xf32>
    %34 = arith.mulf %22, %33 : vector<128x128xf32>
    %35 = vector.broadcast %28 : vector<1x128xf32> to vector<128x128xf32>
    %36 = arith.mulf %35, %27 : vector<128x128xf32>
    %37 = arith.addf %34, %36 : vector<128x128xf32>
    %cst_23 = arith.constant 5.000000e-01 : f32
    %38 = vector.broadcast %cst_23 : f32 to vector<128x128xf32>
    %39 = arith.subf %27, %38 : vector<128x128xf32>
    %40 = vector.broadcast %29 : vector<1x128xf32> to vector<128x128xf32>
    %41 = arith.mulf %40, %39 : vector<128x128xf32>
    %42 = arith.addf %37, %41 : vector<128x128xf32>
    %c0_24 = arith.constant 0 : index
    %c0_25 = arith.constant 0 : index
    %43 = vector.load %arg10[%c0_24, %c0_25] : memref<128x128xf32, #tpu.memory_space<vmem>>, vector<128x128xf32>
    tpu.vector_store %arg10[%c0_24, %c0_25], %42 {strides = array<i32>} : memref<128x128xf32, #tpu.memory_space<vmem>>, vector<128x128xf32>,
    return
  }
  func.func @transform_0(%arg0: i32) -> (i32, i32) {
    %c0_i32 = arith.constant 0 : i32
    %c0_i32_0 = arith.constant 0 : i32
    return %arg0, %c0_i32 : i32, i32
  }
  func.func @transform_1(%arg0: i32) -> (i32, i32) {
    %c0_i32 = arith.constant 0 : i32
    %c0_i32_0 = arith.constant 0 : i32
    %c0_i32_1 = arith.constant 0 : i32
    return %c0_i32, %c0_i32_0 : i32, i32
  }
  func.func @transform_2(%arg0: i32) -> (i32, i32) {
    %c0_i32 = arith.constant 0 : i32
    %c0_i32_0 = arith.constant 0 : i32
    %c0_i32_1 = arith.constant 0 : i32
    return %c0_i32, %c0_i32_0 : i32, i32
  }
  func.func @transform_3(%arg0: i32) -> (i32, i32) {
    %c0_i32 = arith.constant 0 : i32
    %c0_i32_0 = arith.constant 0 : i32
    %c0_i32_1 = arith.constant 0 : i32
    return %c0_i32, %c0_i32_0 : i32, i32
  }
  func.func @transform_4(%arg0: i32) -> (i32, i32) {
    %c0_i32 = arith.constant 0 : i32
    %c0_i32_0 = arith.constant 0 : i32
    %c0_i32_1 = arith.constant 0 : i32
    return %c0_i32, %c0_i32_0 : i32, i32
  }
  func.func @transform_5(%arg0: i32) -> (i32, i32) {
    %c0_i32 = arith.constant 0 : i32
    %c0_i32_0 = arith.constant 0 : i32
    %c0_i32_1 = arith.constant 0 : i32
    return %c0_i32, %c0_i32_0 : i32, i32
  }
  func.func @transform_6(%arg0: i32) -> (i32, i32) {
    %c0_i32 = arith.constant 0 : i32
    %c0_i32_0 = arith.constant 0 : i32
    %c0_i32_1 = arith.constant 0 : i32
    return %c0_i32, %c0_i32_0 : i32, i32
  }
  func.func @transform_7(%arg0: i32) -> (i32, i32) {
    %c0_i32 = arith.constant 0 : i32
    %c0_i32_0 = arith.constant 0 : i32
    %c0_i32_1 = arith.constant 0 : i32
    return %c0_i32, %c0_i32_0 : i32, i32
  }
  func.func @transform_8(%arg0: i32) -> (i32, i32) {
    %c0_i32 = arith.constant 0 : i32
    %c0_i32_0 = arith.constant 0 : i32
    %c0_i32_1 = arith.constant 0 : i32
    return %c0_i32, %c0_i32_0 : i32, i32
  }
  func.func @transform_9(%arg0: i32) -> (i32, i32) {
    %c0_i32 = arith.constant 0 : i32
    %c0_i32_0 = arith.constant 0 : i32
    return %arg0, %c0_i32 : i32, i32
  }
}

module attributes {stable_mosaic.version = 11 : i64} {
  func.func @_anchor_iou_argmax_kernel(%arg0: i32, %arg1: memref<8x4xf32, #tpu.memory_space<smem>>, %arg2: memref<9x2xf32, #tpu.memory_space<vmem>>, %arg3: memref<2x128xf32, #tpu.memory_space<vmem>>, %arg4: memref<2x9x128xf32, #tpu.memory_space<vmem>>, %arg5: memref<2x9x128xi32, #tpu.memory_space<vmem>>) attributes {dimension_semantics = [#tpu.dimension_semantics<arbitrary>], iteration_bounds = array<i64: 1>, scalar_prefetch = 0 : i64, scratch_operands = 0 : i64, tpu.core_type = #tpu.core_type<tc>, window_params = [{transform_indices = @transform_0, window_bounds = array<i64: 8, 4>}, {pipeline_mode = #tpu.pipeline_mode<synchronous>, transform_indices = @transform_1, window_bounds = array<i64: 9, 2>}, {pipeline_mode = #tpu.pipeline_mode<synchronous>, transform_indices = @transform_2, window_bounds = array<i64: 2, 128>}, {pipeline_mode = #tpu.pipeline_mode<synchronous>, transform_indices = @transform_3, window_bounds = array<i64: 2, 9, 128>}, {pipeline_mode = #tpu.pipeline_mode<synchronous>, transform_indices = @transform_4, window_bounds = array<i64: 2, 9, 128>}]} {
    %c0 = arith.constant 0 : index
    %c0_0 = arith.constant 0 : index
    %0 = vector.load %arg2[%c0, %c0_0] : memref<9x2xf32, #tpu.memory_space<vmem>>, vector<9x1xf32>
    %c0_1 = arith.constant 0 : index
    %c1 = arith.constant 1 : index
    %1 = vector.load %arg2[%c0_1, %c1] : memref<9x2xf32, #tpu.memory_space<vmem>>, vector<9x1xf32>
    %c0_2 = arith.constant 0 : index
    %c0_3 = arith.constant 0 : index
    %2 = vector.load %arg3[%c0_2, %c0_3] : memref<2x128xf32, #tpu.memory_space<vmem>>, vector<1x128xf32>
    %c1_4 = arith.constant 1 : index
    %c0_5 = arith.constant 0 : index
    %3 = vector.load %arg3[%c1_4, %c0_5] : memref<2x128xf32, #tpu.memory_space<vmem>>, vector<1x128xf32>
    %cst = arith.constant 5.000000e-01 : f32
    %4 = vector.broadcast %cst : f32 to vector<9x1xf32>
    %5 = arith.mulf %4, %0 : vector<9x1xf32>
    %6 = vector.broadcast %2 : vector<1x128xf32> to vector<9x128xf32>
    %7 = vector.broadcast %5 : vector<9x1xf32> to vector<9x128xf32>
    %8 = arith.subf %6, %7 : vector<9x128xf32>
    %cst_6 = arith.constant 5.000000e-01 : f32
    %9 = vector.broadcast %cst_6 : f32 to vector<9x1xf32>
    %10 = arith.mulf %9, %1 : vector<9x1xf32>
    %11 = vector.broadcast %3 : vector<1x128xf32> to vector<9x128xf32>
    %12 = vector.broadcast %10 : vector<9x1xf32> to vector<9x128xf32>
    %13 = arith.subf %11, %12 : vector<9x128xf32>
    %cst_7 = arith.constant 5.000000e-01 : f32
    %14 = vector.broadcast %cst_7 : f32 to vector<9x1xf32>
    %15 = arith.mulf %14, %0 : vector<9x1xf32>
    %16 = vector.broadcast %2 : vector<1x128xf32> to vector<9x128xf32>
    %17 = vector.broadcast %15 : vector<9x1xf32> to vector<9x128xf32>
    %18 = arith.addf %16, %17 : vector<9x128xf32>
    %cst_8 = arith.constant 5.000000e-01 : f32
    %19 = vector.broadcast %cst_8 : f32 to vector<9x1xf32>
    %20 = arith.mulf %19, %1 : vector<9x1xf32>
    %21 = vector.broadcast %3 : vector<1x128xf32> to vector<9x128xf32>
    %22 = vector.broadcast %20 : vector<9x1xf32> to vector<9x128xf32>
    %23 = arith.addf %21, %22 : vector<9x128xf32>
    %c0_9 = arith.constant 0 : index
    %c0_10 = arith.constant 0 : index
    %24 = memref.load %arg1[%c0_9, %c0_10] : memref<8x4xf32, #tpu.memory_space<smem>>
    %c0_11 = arith.constant 0 : index
    %c1_12 = arith.constant 1 : index
    %25 = memref.load %arg1[%c0_11, %c1_12] : memref<8x4xf32, #tpu.memory_space<smem>>
    %c0_13 = arith.constant 0 : index
    %c2 = arith.constant 2 : index
    %26 = memref.load %arg1[%c0_13, %c2] : memref<8x4xf32, #tpu.memory_space<smem>>
    %c0_14 = arith.constant 0 : index
    %c3 = arith.constant 3 : index
    %27 = memref.load %arg1[%c0_14, %c3] : memref<8x4xf32, #tpu.memory_space<smem>>
    %28 = vector.broadcast %24 : f32 to vector<9x128xf32>
    %29 = arith.subf %18, %28 : vector<9x128xf32>
    %30 = vector.broadcast %26 : f32 to vector<9x128xf32>
    %31 = arith.subf %30, %8 : vector<9x128xf32>
    %32 = arith.minimumf %29, %31 : vector<9x128xf32>
    %33 = vector.broadcast %25 : f32 to vector<9x128xf32>
    %34 = arith.subf %23, %33 : vector<9x128xf32>
    %35 = vector.broadcast %27 : f32 to vector<9x128xf32>
    %36 = arith.subf %35, %13 : vector<9x128xf32>
    %37 = arith.minimumf %34, %36 : vector<9x128xf32>
    %38 = vector.broadcast %24 : f32 to vector<9x128xf32>
    %39 = arith.subf %18, %38 : vector<9x128xf32>
    %40 = vector.broadcast %26 : f32 to vector<9x128xf32>
    %41 = arith.subf %40, %8 : vector<9x128xf32>
    %42 = arith.maximumf %39, %41 : vector<9x128xf32>
    %43 = vector.broadcast %25 : f32 to vector<9x128xf32>
    %44 = arith.subf %23, %43 : vector<9x128xf32>
    %45 = vector.broadcast %27 : f32 to vector<9x128xf32>
    %46 = arith.subf %45, %13 : vector<9x128xf32>
    %47 = arith.maximumf %44, %46 : vector<9x128xf32>
    %48 = vector.broadcast %24 : f32 to vector<9x128xf32>
    %49 = arith.subf %18, %48 : vector<9x128xf32>
    %cst_15 = arith.constant 0.000000e+00 : f32
    %50 = vector.broadcast %cst_15 : f32 to vector<9x128xf32>
    %51 = arith.cmpf olt, %49, %50 : vector<9x128xf32>
    %cst_16 = arith.constant 0.000000e+00 : f32
    %52 = vector.broadcast %cst_16 : f32 to vector<9x128xf32>
    %53 = arith.select %51, %52, %32 : vector<9x128xi1>, vector<9x128xf32>
    %54 = vector.broadcast %26 : f32 to vector<9x128xf32>
    %55 = arith.subf %54, %8 : vector<9x128xf32>
    %cst_17 = arith.constant 0.000000e+00 : f32
    %56 = vector.broadcast %cst_17 : f32 to vector<9x128xf32>
    %57 = arith.cmpf olt, %55, %56 : vector<9x128xf32>
    %cst_18 = arith.constant 0.000000e+00 : f32
    %58 = vector.broadcast %cst_18 : f32 to vector<9x128xf32>
    %59 = arith.select %57, %58, %53 : vector<9x128xi1>, vector<9x128xf32>
    %60 = arith.mulf %59, %37 : vector<9x128xf32>
    %61 = arith.mulf %42, %47 : vector<9x128xf32>
    %62 = arith.divf %60, %61 : vector<9x128xf32>
    %c0_i32 = arith.constant 0 : i32
    %63 = vector.broadcast %c0_i32 : i32 to vector<9x128xi32>
    %c1_19 = arith.constant 1 : index
    %c0_20 = arith.constant 0 : index
    %64 = memref.load %arg1[%c1_19, %c0_20] : memref<8x4xf32, #tpu.memory_space<smem>>
    %c1_21 = arith.constant 1 : index
    %c1_22 = arith.constant 1 : index
    %65 = memref.load %arg1[%c1_21, %c1_22] : memref<8x4xf32, #tpu.memory_space<smem>>
    %c1_23 = arith.constant 1 : index
    %c2_24 = arith.constant 2 : index
    %66 = memref.load %arg1[%c1_23, %c2_24] : memref<8x4xf32, #tpu.memory_space<smem>>
    %c1_25 = arith.constant 1 : index
    %c3_26 = arith.constant 3 : index
    %67 = memref.load %arg1[%c1_25, %c3_26] : memref<8x4xf32, #tpu.memory_space<smem>>
    %68 = vector.broadcast %64 : f32 to vector<9x128xf32>
    %69 = arith.subf %18, %68 : vector<9x128xf32>
    %70 = vector.broadcast %66 : f32 to vector<9x128xf32>
    %71 = arith.subf %70, %8 : vector<9x128xf32>
    %72 = arith.minimumf %69, %71 : vector<9x128xf32>
    %73 = vector.broadcast %65 : f32 to vector<9x128xf32>
    %74 = arith.subf %23, %73 : vector<9x128xf32>
    %75 = vector.broadcast %67 : f32 to vector<9x128xf32>
    %76 = arith.subf %75, %13 : vector<9x128xf32>
    %77 = arith.minimumf %74, %76 : vector<9x128xf32>
    %78 = vector.broadcast %64 : f32 to vector<9x128xf32>
    %79 = arith.subf %18, %78 : vector<9x128xf32>
    %80 = vector.broadcast %66 : f32 to vector<9x128xf32>
    %81 = arith.subf %80, %8 : vector<9x128xf32>
    %82 = arith.maximumf %79, %81 : vector<9x128xf32>
    %83 = vector.broadcast %65 : f32 to vector<9x128xf32>
    %84 = arith.subf %23, %83 : vector<9x128xf32>
    %85 = vector.broadcast %67 : f32 to vector<9x128xf32>
    %86 = arith.subf %85, %13 : vector<9x128xf32>
    %87 = arith.maximumf %84, %86 : vector<9x128xf32>
    %88 = vector.broadcast %64 : f32 to vector<9x128xf32>
    %89 = arith.subf %18, %88 : vector<9x128xf32>
    %cst_27 = arith.constant 0.000000e+00 : f32
    %90 = vector.broadcast %cst_27 : f32 to vector<9x128xf32>
    %91 = arith.cmpf olt, %89, %90 : vector<9x128xf32>
    %cst_28 = arith.constant 0.000000e+00 : f32
    %92 = vector.broadcast %cst_28 : f32 to vector<9x128xf32>
    %93 = arith.select %91, %92, %72 : vector<9x128xi1>, vector<9x128xf32>
    %94 = vector.broadcast %66 : f32 to vector<9x128xf32>
    %95 = arith.subf %94, %8 : vector<9x128xf32>
    %cst_29 = arith.constant 0.000000e+00 : f32
    %96 = vector.broadcast %cst_29 : f32 to vector<9x128xf32>
    %97 = arith.cmpf olt, %95, %96 : vector<9x128xf32>
    %cst_30 = arith.constant 0.000000e+00 : f32
    %98 = vector.broadcast %cst_30 : f32 to vector<9x128xf32>
    %99 = arith.select %97, %98, %93 : vector<9x128xi1>, vector<9x128xf32>
    %100 = arith.mulf %99, %77 : vector<9x128xf32>
    %101 = arith.mulf %82, %87 : vector<9x128xf32>
    %102 = arith.divf %100, %101 : vector<9x128xf32>
    %103 = arith.cmpf ogt, %102, %62 : vector<9x128xf32>
    %104 = arith.select %103, %102, %62 : vector<9x128xi1>, vector<9x128xf32>
    %c1_i32 = arith.constant 1 : i32
    %105 = vector.broadcast %c1_i32 : i32 to vector<9x128xi32>
    %106 = arith.select %103, %105, %63 : vector<9x128xi1>, vector<9x128xi32>
    %c2_31 = arith.constant 2 : index
    %c0_32 = arith.constant 0 : index
    %107 = memref.load %arg1[%c2_31, %c0_32] : memref<8x4xf32, #tpu.memory_space<smem>>
    %c2_33 = arith.constant 2 : index
    %c1_34 = arith.constant 1 : index
    %108 = memref.load %arg1[%c2_33, %c1_34] : memref<8x4xf32, #tpu.memory_space<smem>>
    %c2_35 = arith.constant 2 : index
    %c2_36 = arith.constant 2 : index
    %109 = memref.load %arg1[%c2_35, %c2_36] : memref<8x4xf32, #tpu.memory_space<smem>>
    %c2_37 = arith.constant 2 : index
    %c3_38 = arith.constant 3 : index
    %110 = memref.load %arg1[%c2_37, %c3_38] : memref<8x4xf32, #tpu.memory_space<smem>>
    %111 = vector.broadcast %107 : f32 to vector<9x128xf32>
    %112 = arith.subf %18, %111 : vector<9x128xf32>
    %113 = vector.broadcast %109 : f32 to vector<9x128xf32>
    %114 = arith.subf %113, %8 : vector<9x128xf32>
    %115 = arith.minimumf %112, %114 : vector<9x128xf32>
    %116 = vector.broadcast %108 : f32 to vector<9x128xf32>
    %117 = arith.subf %23, %116 : vector<9x128xf32>
    %118 = vector.broadcast %110 : f32 to vector<9x128xf32>
    %119 = arith.subf %118, %13 : vector<9x128xf32>
    %120 = arith.minimumf %117, %119 : vector<9x128xf32>
    %121 = vector.broadcast %107 : f32 to vector<9x128xf32>
    %122 = arith.subf %18, %121 : vector<9x128xf32>
    %123 = vector.broadcast %109 : f32 to vector<9x128xf32>
    %124 = arith.subf %123, %8 : vector<9x128xf32>
    %125 = arith.maximumf %122, %124 : vector<9x128xf32>
    %126 = vector.broadcast %108 : f32 to vector<9x128xf32>
    %127 = arith.subf %23, %126 : vector<9x128xf32>
    %128 = vector.broadcast %110 : f32 to vector<9x128xf32>
    %129 = arith.subf %128, %13 : vector<9x128xf32>
    %130 = arith.maximumf %127, %129 : vector<9x128xf32>
    %131 = vector.broadcast %107 : f32 to vector<9x128xf32>
    %132 = arith.subf %18, %131 : vector<9x128xf32>
    %cst_39 = arith.constant 0.000000e+00 : f32
    %133 = vector.broadcast %cst_39 : f32 to vector<9x128xf32>
    %134 = arith.cmpf olt, %132, %133 : vector<9x128xf32>
    %cst_40 = arith.constant 0.000000e+00 : f32
    %135 = vector.broadcast %cst_40 : f32 to vector<9x128xf32>
    %136 = arith.select %134, %135, %115 : vector<9x128xi1>, vector<9x128xf32>
    %137 = vector.broadcast %109 : f32 to vector<9x128xf32>
    %138 = arith.subf %137, %8 : vector<9x128xf32>
    %cst_41 = arith.constant 0.000000e+00 : f32
    %139 = vector.broadcast %cst_41 : f32 to vector<9x128xf32>
    %140 = arith.cmpf olt, %138, %139 : vector<9x128xf32>
    %cst_42 = arith.constant 0.000000e+00 : f32
    %141 = vector.broadcast %cst_42 : f32 to vector<9x128xf32>
    %142 = arith.select %140, %141, %136 : vector<9x128xi1>, vector<9x128xf32>
    %143 = arith.mulf %142, %120 : vector<9x128xf32>
    %144 = arith.mulf %125, %130 : vector<9x128xf32>
    %145 = arith.divf %143, %144 : vector<9x128xf32>
    %146 = arith.cmpf ogt, %145, %104 : vector<9x128xf32>
    %147 = arith.select %146, %145, %104 : vector<9x128xi1>, vector<9x128xf32>
    %c2_i32 = arith.constant 2 : i32
    %148 = vector.broadcast %c2_i32 : i32 to vector<9x128xi32>
    %149 = arith.select %146, %148, %106 : vector<9x128xi1>, vector<9x128xi32>
    %c3_43 = arith.constant 3 : index
    %c0_44 = arith.constant 0 : index
    %150 = memref.load %arg1[%c3_43, %c0_44] : memref<8x4xf32, #tpu.memory_space<smem>>
    %c3_45 = arith.constant 3 : index
    %c1_46 = arith.constant 1 : index
    %151 = memref.load %arg1[%c3_45, %c1_46] : memref<8x4xf32, #tpu.memory_space<smem>>
    %c3_47 = arith.constant 3 : index
    %c2_48 = arith.constant 2 : index
    %152 = memref.load %arg1[%c3_47, %c2_48] : memref<8x4xf32, #tpu.memory_space<smem>>
    %c3_49 = arith.constant 3 : index
    %c3_50 = arith.constant 3 : index
    %153 = memref.load %arg1[%c3_49, %c3_50] : memref<8x4xf32, #tpu.memory_space<smem>>
    %154 = vector.broadcast %150 : f32 to vector<9x128xf32>
    %155 = arith.subf %18, %154 : vector<9x128xf32>
    %156 = vector.broadcast %152 : f32 to vector<9x128xf32>
    %157 = arith.subf %156, %8 : vector<9x128xf32>
    %158 = arith.minimumf %155, %157 : vector<9x128xf32>
    %159 = vector.broadcast %151 : f32 to vector<9x128xf32>
    %160 = arith.subf %23, %159 : vector<9x128xf32>
    %161 = vector.broadcast %153 : f32 to vector<9x128xf32>
    %162 = arith.subf %161, %13 : vector<9x128xf32>
    %163 = arith.minimumf %160, %162 : vector<9x128xf32>
    %164 = vector.broadcast %150 : f32 to vector<9x128xf32>
    %165 = arith.subf %18, %164 : vector<9x128xf32>
    %166 = vector.broadcast %152 : f32 to vector<9x128xf32>
    %167 = arith.subf %166, %8 : vector<9x128xf32>
    %168 = arith.maximumf %165, %167 : vector<9x128xf32>
    %169 = vector.broadcast %151 : f32 to vector<9x128xf32>
    %170 = arith.subf %23, %169 : vector<9x128xf32>
    %171 = vector.broadcast %153 : f32 to vector<9x128xf32>
    %172 = arith.subf %171, %13 : vector<9x128xf32>
    %173 = arith.maximumf %170, %172 : vector<9x128xf32>
    %174 = vector.broadcast %150 : f32 to vector<9x128xf32>
    %175 = arith.subf %18, %174 : vector<9x128xf32>
    %cst_51 = arith.constant 0.000000e+00 : f32
    %176 = vector.broadcast %cst_51 : f32 to vector<9x128xf32>
    %177 = arith.cmpf olt, %175, %176 : vector<9x128xf32>
    %cst_52 = arith.constant 0.000000e+00 : f32
    %178 = vector.broadcast %cst_52 : f32 to vector<9x128xf32>
    %179 = arith.select %177, %178, %158 : vector<9x128xi1>, vector<9x128xf32>
    %180 = vector.broadcast %152 : f32 to vector<9x128xf32>
    %181 = arith.subf %180, %8 : vector<9x128xf32>
    %cst_53 = arith.constant 0.000000e+00 : f32
    %182 = vector.broadcast %cst_53 : f32 to vector<9x128xf32>
    %183 = arith.cmpf olt, %181, %182 : vector<9x128xf32>
    %cst_54 = arith.constant 0.000000e+00 : f32
    %184 = vector.broadcast %cst_54 : f32 to vector<9x128xf32>
    %185 = arith.select %183, %184, %179 : vector<9x128xi1>, vector<9x128xf32>
    %186 = arith.mulf %185, %163 : vector<9x128xf32>
    %187 = arith.mulf %168, %173 : vector<9x128xf32>
    %188 = arith.divf %186, %187 : vector<9x128xf32>
    %189 = arith.cmpf ogt, %188, %147 : vector<9x128xf32>
    %190 = arith.select %189, %188, %147 : vector<9x128xi1>, vector<9x128xf32>
    %c3_i32 = arith.constant 3 : i32
    %191 = vector.broadcast %c3_i32 : i32 to vector<9x128xi32>
    %192 = arith.select %189, %191, %149 : vector<9x128xi1>, vector<9x128xi32>
    %c0_55 = arith.constant 0 : index
    %c0_56 = arith.constant 0 : index
    %c0_57 = arith.constant 0 : index
    %193 = vector.load %arg4[%c0_55, %c0_56, %c0_57] : memref<2x9x128xf32, #tpu.memory_space<vmem>>, vector<1x9x128xf32>
    %194 = vector.shape_cast %193 : vector<1x9x128xf32> to vector<9x128xf32>
    %195 = vector.shape_cast %190 : vector<9x128xf32> to vector<1x9x128xf32>
    tpu.vector_store %arg4[%c0_55, %c0_56, %c0_57], %195 {strides = array<i32>} : memref<2x9x128xf32, #tpu.memory_space<vmem>>, vector<1x9x128xf32>,
    %c0_58 = arith.constant 0 : index
    %c0_59 = arith.constant 0 : index
    %c0_60 = arith.constant 0 : index
    %196 = vector.load %arg5[%c0_58, %c0_59, %c0_60] : memref<2x9x128xi32, #tpu.memory_space<vmem>>, vector<1x9x128xi32>
    %197 = vector.shape_cast %196 : vector<1x9x128xi32> to vector<9x128xi32>
    %198 = vector.shape_cast %192 : vector<9x128xi32> to vector<1x9x128xi32>
    tpu.vector_store %arg5[%c0_58, %c0_59, %c0_60], %198 {strides = array<i32>} : memref<2x9x128xi32, #tpu.memory_space<vmem>>, vector<1x9x128xi32>,
    %c4 = arith.constant 4 : index
    %c0_61 = arith.constant 0 : index
    %199 = memref.load %arg1[%c4, %c0_61] : memref<8x4xf32, #tpu.memory_space<smem>>
    %c4_62 = arith.constant 4 : index
    %c1_63 = arith.constant 1 : index
    %200 = memref.load %arg1[%c4_62, %c1_63] : memref<8x4xf32, #tpu.memory_space<smem>>
    %c4_64 = arith.constant 4 : index
    %c2_65 = arith.constant 2 : index
    %201 = memref.load %arg1[%c4_64, %c2_65] : memref<8x4xf32, #tpu.memory_space<smem>>
    %c4_66 = arith.constant 4 : index
    %c3_67 = arith.constant 3 : index
    %202 = memref.load %arg1[%c4_66, %c3_67] : memref<8x4xf32, #tpu.memory_space<smem>>
    %203 = vector.broadcast %199 : f32 to vector<9x128xf32>
    %204 = arith.subf %18, %203 : vector<9x128xf32>
    %205 = vector.broadcast %201 : f32 to vector<9x128xf32>
    %206 = arith.subf %205, %8 : vector<9x128xf32>
    %207 = arith.minimumf %204, %206 : vector<9x128xf32>
    %208 = vector.broadcast %200 : f32 to vector<9x128xf32>
    %209 = arith.subf %23, %208 : vector<9x128xf32>
    %210 = vector.broadcast %202 : f32 to vector<9x128xf32>
    %211 = arith.subf %210, %13 : vector<9x128xf32>
    %212 = arith.minimumf %209, %211 : vector<9x128xf32>
    %213 = vector.broadcast %199 : f32 to vector<9x128xf32>
    %214 = arith.subf %18, %213 : vector<9x128xf32>
    %215 = vector.broadcast %201 : f32 to vector<9x128xf32>
    %216 = arith.subf %215, %8 : vector<9x128xf32>
    %217 = arith.maximumf %214, %216 : vector<9x128xf32>
    %218 = vector.broadcast %200 : f32 to vector<9x128xf32>
    %219 = arith.subf %23, %218 : vector<9x128xf32>
    %220 = vector.broadcast %202 : f32 to vector<9x128xf32>
    %221 = arith.subf %220, %13 : vector<9x128xf32>
    %222 = arith.maximumf %219, %221 : vector<9x128xf32>
    %223 = vector.broadcast %199 : f32 to vector<9x128xf32>
    %224 = arith.subf %18, %223 : vector<9x128xf32>
    %cst_68 = arith.constant 0.000000e+00 : f32
    %225 = vector.broadcast %cst_68 : f32 to vector<9x128xf32>
    %226 = arith.cmpf olt, %224, %225 : vector<9x128xf32>
    %cst_69 = arith.constant 0.000000e+00 : f32
    %227 = vector.broadcast %cst_69 : f32 to vector<9x128xf32>
    %228 = arith.select %226, %227, %207 : vector<9x128xi1>, vector<9x128xf32>
    %229 = vector.broadcast %201 : f32 to vector<9x128xf32>
    %230 = arith.subf %229, %8 : vector<9x128xf32>
    %cst_70 = arith.constant 0.000000e+00 : f32
    %231 = vector.broadcast %cst_70 : f32 to vector<9x128xf32>
    %232 = arith.cmpf olt, %230, %231 : vector<9x128xf32>
    %cst_71 = arith.constant 0.000000e+00 : f32
    %233 = vector.broadcast %cst_71 : f32 to vector<9x128xf32>
    %234 = arith.select %232, %233, %228 : vector<9x128xi1>, vector<9x128xf32>
    %235 = arith.mulf %234, %212 : vector<9x128xf32>
    %236 = arith.mulf %217, %222 : vector<9x128xf32>
    %237 = arith.divf %235, %236 : vector<9x128xf32>
    %c0_i32_72 = arith.constant 0 : i32
    %238 = vector.broadcast %c0_i32_72 : i32 to vector<9x128xi32>
    %c5 = arith.constant 5 : index
    %c0_73 = arith.constant 0 : index
    %239 = memref.load %arg1[%c5, %c0_73] : memref<8x4xf32, #tpu.memory_space<smem>>
    %c5_74 = arith.constant 5 : index
    %c1_75 = arith.constant 1 : index
    %240 = memref.load %arg1[%c5_74, %c1_75] : memref<8x4xf32, #tpu.memory_space<smem>>
    %c5_76 = arith.constant 5 : index
    %c2_77 = arith.constant 2 : index
    %241 = memref.load %arg1[%c5_76, %c2_77] : memref<8x4xf32, #tpu.memory_space<smem>>
    %c5_78 = arith.constant 5 : index
    %c3_79 = arith.constant 3 : index
    %242 = memref.load %arg1[%c5_78, %c3_79] : memref<8x4xf32, #tpu.memory_space<smem>>
    %243 = vector.broadcast %239 : f32 to vector<9x128xf32>
    %244 = arith.subf %18, %243 : vector<9x128xf32>
    %245 = vector.broadcast %241 : f32 to vector<9x128xf32>
    %246 = arith.subf %245, %8 : vector<9x128xf32>
    %247 = arith.minimumf %244, %246 : vector<9x128xf32>
    %248 = vector.broadcast %240 : f32 to vector<9x128xf32>
    %249 = arith.subf %23, %248 : vector<9x128xf32>
    %250 = vector.broadcast %242 : f32 to vector<9x128xf32>
    %251 = arith.subf %250, %13 : vector<9x128xf32>
    %252 = arith.minimumf %249, %251 : vector<9x128xf32>
    %253 = vector.broadcast %239 : f32 to vector<9x128xf32>
    %254 = arith.subf %18, %253 : vector<9x128xf32>
    %255 = vector.broadcast %241 : f32 to vector<9x128xf32>
    %256 = arith.subf %255, %8 : vector<9x128xf32>
    %257 = arith.maximumf %254, %256 : vector<9x128xf32>
    %258 = vector.broadcast %240 : f32 to vector<9x128xf32>
    %259 = arith.subf %23, %258 : vector<9x128xf32>
    %260 = vector.broadcast %242 : f32 to vector<9x128xf32>
    %261 = arith.subf %260, %13 : vector<9x128xf32>
    %262 = arith.maximumf %259, %261 : vector<9x128xf32>
    %263 = vector.broadcast %239 : f32 to vector<9x128xf32>
    %264 = arith.subf %18, %263 : vector<9x128xf32>
    %cst_80 = arith.constant 0.000000e+00 : f32
    %265 = vector.broadcast %cst_80 : f32 to vector<9x128xf32>
    %266 = arith.cmpf olt, %264, %265 : vector<9x128xf32>
    %cst_81 = arith.constant 0.000000e+00 : f32
    %267 = vector.broadcast %cst_81 : f32 to vector<9x128xf32>
    %268 = arith.select %266, %267, %247 : vector<9x128xi1>, vector<9x128xf32>
    %269 = vector.broadcast %241 : f32 to vector<9x128xf32>
    %270 = arith.subf %269, %8 : vector<9x128xf32>
    %cst_82 = arith.constant 0.000000e+00 : f32
    %271 = vector.broadcast %cst_82 : f32 to vector<9x128xf32>
    %272 = arith.cmpf olt, %270, %271 : vector<9x128xf32>
    %cst_83 = arith.constant 0.000000e+00 : f32
    %273 = vector.broadcast %cst_83 : f32 to vector<9x128xf32>
    %274 = arith.select %272, %273, %268 : vector<9x128xi1>, vector<9x128xf32>
    %275 = arith.mulf %274, %252 : vector<9x128xf32>
    %276 = arith.mulf %257, %262 : vector<9x128xf32>
    %277 = arith.divf %275, %276 : vector<9x128xf32>
    %278 = arith.cmpf ogt, %277, %237 : vector<9x128xf32>
    %279 = arith.select %278, %277, %237 : vector<9x128xi1>, vector<9x128xf32>
    %c1_i32_84 = arith.constant 1 : i32
    %280 = vector.broadcast %c1_i32_84 : i32 to vector<9x128xi32>
    %281 = arith.select %278, %280, %238 : vector<9x128xi1>, vector<9x128xi32>
    %c6 = arith.constant 6 : index
    %c0_85 = arith.constant 0 : index
    %282 = memref.load %arg1[%c6, %c0_85] : memref<8x4xf32, #tpu.memory_space<smem>>
    %c6_86 = arith.constant 6 : index
    %c1_87 = arith.constant 1 : index
    %283 = memref.load %arg1[%c6_86, %c1_87] : memref<8x4xf32, #tpu.memory_space<smem>>
    %c6_88 = arith.constant 6 : index
    %c2_89 = arith.constant 2 : index
    %284 = memref.load %arg1[%c6_88, %c2_89] : memref<8x4xf32, #tpu.memory_space<smem>>
    %c6_90 = arith.constant 6 : index
    %c3_91 = arith.constant 3 : index
    %285 = memref.load %arg1[%c6_90, %c3_91] : memref<8x4xf32, #tpu.memory_space<smem>>
    %286 = vector.broadcast %282 : f32 to vector<9x128xf32>
    %287 = arith.subf %18, %286 : vector<9x128xf32>
    %288 = vector.broadcast %284 : f32 to vector<9x128xf32>
    %289 = arith.subf %288, %8 : vector<9x128xf32>
    %290 = arith.minimumf %287, %289 : vector<9x128xf32>
    %291 = vector.broadcast %283 : f32 to vector<9x128xf32>
    %292 = arith.subf %23, %291 : vector<9x128xf32>
    %293 = vector.broadcast %285 : f32 to vector<9x128xf32>
    %294 = arith.subf %293, %13 : vector<9x128xf32>
    %295 = arith.minimumf %292, %294 : vector<9x128xf32>
    %296 = vector.broadcast %282 : f32 to vector<9x128xf32>
    %297 = arith.subf %18, %296 : vector<9x128xf32>
    %298 = vector.broadcast %284 : f32 to vector<9x128xf32>
    %299 = arith.subf %298, %8 : vector<9x128xf32>
    %300 = arith.maximumf %297, %299 : vector<9x128xf32>
    %301 = vector.broadcast %283 : f32 to vector<9x128xf32>
    %302 = arith.subf %23, %301 : vector<9x128xf32>
    %303 = vector.broadcast %285 : f32 to vector<9x128xf32>
    %304 = arith.subf %303, %13 : vector<9x128xf32>
    %305 = arith.maximumf %302, %304 : vector<9x128xf32>
    %306 = vector.broadcast %282 : f32 to vector<9x128xf32>
    %307 = arith.subf %18, %306 : vector<9x128xf32>
    %cst_92 = arith.constant 0.000000e+00 : f32
    %308 = vector.broadcast %cst_92 : f32 to vector<9x128xf32>
    %309 = arith.cmpf olt, %307, %308 : vector<9x128xf32>
    %cst_93 = arith.constant 0.000000e+00 : f32
    %310 = vector.broadcast %cst_93 : f32 to vector<9x128xf32>
    %311 = arith.select %309, %310, %290 : vector<9x128xi1>, vector<9x128xf32>
    %312 = vector.broadcast %284 : f32 to vector<9x128xf32>
    %313 = arith.subf %312, %8 : vector<9x128xf32>
    %cst_94 = arith.constant 0.000000e+00 : f32
    %314 = vector.broadcast %cst_94 : f32 to vector<9x128xf32>
    %315 = arith.cmpf olt, %313, %314 : vector<9x128xf32>
    %cst_95 = arith.constant 0.000000e+00 : f32
    %316 = vector.broadcast %cst_95 : f32 to vector<9x128xf32>
    %317 = arith.select %315, %316, %311 : vector<9x128xi1>, vector<9x128xf32>
    %318 = arith.mulf %317, %295 : vector<9x128xf32>
    %319 = arith.mulf %300, %305 : vector<9x128xf32>
    %320 = arith.divf %318, %319 : vector<9x128xf32>
    %321 = arith.cmpf ogt, %320, %279 : vector<9x128xf32>
    %322 = arith.select %321, %320, %279 : vector<9x128xi1>, vector<9x128xf32>
    %c2_i32_96 = arith.constant 2 : i32
    %323 = vector.broadcast %c2_i32_96 : i32 to vector<9x128xi32>
    %324 = arith.select %321, %323, %281 : vector<9x128xi1>, vector<9x128xi32>
    %c7 = arith.constant 7 : index
    %c0_97 = arith.constant 0 : index
    %325 = memref.load %arg1[%c7, %c0_97] : memref<8x4xf32, #tpu.memory_space<smem>>
    %c7_98 = arith.constant 7 : index
    %c1_99 = arith.constant 1 : index
    %326 = memref.load %arg1[%c7_98, %c1_99] : memref<8x4xf32, #tpu.memory_space<smem>>
    %c7_100 = arith.constant 7 : index
    %c2_101 = arith.constant 2 : index
    %327 = memref.load %arg1[%c7_100, %c2_101] : memref<8x4xf32, #tpu.memory_space<smem>>
    %c7_102 = arith.constant 7 : index
    %c3_103 = arith.constant 3 : index
    %328 = memref.load %arg1[%c7_102, %c3_103] : memref<8x4xf32, #tpu.memory_space<smem>>
    %329 = vector.broadcast %325 : f32 to vector<9x128xf32>
    %330 = arith.subf %18, %329 : vector<9x128xf32>
    %331 = vector.broadcast %327 : f32 to vector<9x128xf32>
    %332 = arith.subf %331, %8 : vector<9x128xf32>
    %333 = arith.minimumf %330, %332 : vector<9x128xf32>
    %334 = vector.broadcast %326 : f32 to vector<9x128xf32>
    %335 = arith.subf %23, %334 : vector<9x128xf32>
    %336 = vector.broadcast %328 : f32 to vector<9x128xf32>
    %337 = arith.subf %336, %13 : vector<9x128xf32>
    %338 = arith.minimumf %335, %337 : vector<9x128xf32>
    %339 = vector.broadcast %325 : f32 to vector<9x128xf32>
    %340 = arith.subf %18, %339 : vector<9x128xf32>
    %341 = vector.broadcast %327 : f32 to vector<9x128xf32>
    %342 = arith.subf %341, %8 : vector<9x128xf32>
    %343 = arith.maximumf %340, %342 : vector<9x128xf32>
    %344 = vector.broadcast %326 : f32 to vector<9x128xf32>
    %345 = arith.subf %23, %344 : vector<9x128xf32>
    %346 = vector.broadcast %328 : f32 to vector<9x128xf32>
    %347 = arith.subf %346, %13 : vector<9x128xf32>
    %348 = arith.maximumf %345, %347 : vector<9x128xf32>
    %349 = vector.broadcast %325 : f32 to vector<9x128xf32>
    %350 = arith.subf %18, %349 : vector<9x128xf32>
    %cst_104 = arith.constant 0.000000e+00 : f32
    %351 = vector.broadcast %cst_104 : f32 to vector<9x128xf32>
    %352 = arith.cmpf olt, %350, %351 : vector<9x128xf32>
    %cst_105 = arith.constant 0.000000e+00 : f32
    %353 = vector.broadcast %cst_105 : f32 to vector<9x128xf32>
    %354 = arith.select %352, %353, %333 : vector<9x128xi1>, vector<9x128xf32>
    %355 = vector.broadcast %327 : f32 to vector<9x128xf32>
    %356 = arith.subf %355, %8 : vector<9x128xf32>
    %cst_106 = arith.constant 0.000000e+00 : f32
    %357 = vector.broadcast %cst_106 : f32 to vector<9x128xf32>
    %358 = arith.cmpf olt, %356, %357 : vector<9x128xf32>
    %cst_107 = arith.constant 0.000000e+00 : f32
    %359 = vector.broadcast %cst_107 : f32 to vector<9x128xf32>
    %360 = arith.select %358, %359, %354 : vector<9x128xi1>, vector<9x128xf32>
    %361 = arith.mulf %360, %338 : vector<9x128xf32>
    %362 = arith.mulf %343, %348 : vector<9x128xf32>
    %363 = arith.divf %361, %362 : vector<9x128xf32>
    %364 = arith.cmpf ogt, %363, %322 : vector<9x128xf32>
    %365 = arith.select %364, %363, %322 : vector<9x128xi1>, vector<9x128xf32>
    %c3_i32_108 = arith.constant 3 : i32
    %366 = vector.broadcast %c3_i32_108 : i32 to vector<9x128xi32>
    %367 = arith.select %364, %366, %324 : vector<9x128xi1>, vector<9x128xi32>
    %c1_109 = arith.constant 1 : index
    %c0_110 = arith.constant 0 : index
    %c0_111 = arith.constant 0 : index
    %368 = vector.load %arg4[%c1_109, %c0_110, %c0_111] : memref<2x9x128xf32, #tpu.memory_space<vmem>>, vector<1x9x128xf32>
    %369 = vector.shape_cast %368 : vector<1x9x128xf32> to vector<9x128xf32>
    %370 = vector.shape_cast %365 : vector<9x128xf32> to vector<1x9x128xf32>
    tpu.vector_store %arg4[%c1_109, %c0_110, %c0_111], %370 {strides = array<i32>} : memref<2x9x128xf32, #tpu.memory_space<vmem>>, vector<1x9x128xf32>,
    %c1_112 = arith.constant 1 : index
    %c0_113 = arith.constant 0 : index
    %c0_114 = arith.constant 0 : index
    %371 = vector.load %arg5[%c1_112, %c0_113, %c0_114] : memref<2x9x128xi32, #tpu.memory_space<vmem>>, vector<1x9x128xi32>
    %372 = vector.shape_cast %371 : vector<1x9x128xi32> to vector<9x128xi32>
    %373 = vector.shape_cast %367 : vector<9x128xi32> to vector<1x9x128xi32>
    tpu.vector_store %arg5[%c1_112, %c0_113, %c0_114], %373 {strides = array<i32>} : memref<2x9x128xi32, #tpu.memory_space<vmem>>, vector<1x9x128xi32>,
    return
  }
  func.func @transform_0(%arg0: i32) -> (i32, i32) {
    %c0_i32 = arith.constant 0 : i32
    %c0_i32_0 = arith.constant 0 : i32
    %c0_i32_1 = arith.constant 0 : i32
    return %c0_i32, %c0_i32_0 : i32, i32
  }
  func.func @transform_1(%arg0: i32) -> (i32, i32) {
    %c0_i32 = arith.constant 0 : i32
    %c0_i32_0 = arith.constant 0 : i32
    %c0_i32_1 = arith.constant 0 : i32
    return %c0_i32, %c0_i32_0 : i32, i32
  }
  func.func @transform_2(%arg0: i32) -> (i32, i32) {
    %c0_i32 = arith.constant 0 : i32
    %c0_i32_0 = arith.constant 0 : i32
    %c0_i32_1 = arith.constant 0 : i32
    return %c0_i32, %c0_i32_0 : i32, i32
  }
  func.func @transform_3(%arg0: i32) -> (i32, i32, i32) {
    %c0_i32 = arith.constant 0 : i32
    %c0_i32_0 = arith.constant 0 : i32
    %c0_i32_1 = arith.constant 0 : i32
    %c0_i32_2 = arith.constant 0 : i32
    return %c0_i32, %c0_i32_0, %c0_i32_1 : i32, i32, i32
  }
  func.func @transform_4(%arg0: i32) -> (i32, i32, i32) {
    %c0_i32 = arith.constant 0 : i32
    %c0_i32_0 = arith.constant 0 : i32
    %c0_i32_1 = arith.constant 0 : i32
    %c0_i32_2 = arith.constant 0 : i32
    return %c0_i32, %c0_i32_0, %c0_i32_1 : i32, i32, i32
  }
}

</mosaic_0001>

<bundles_post_ra>
// kernel: tile.16
= control target key start
LH: loop header
LB: loop body
LE: loop exit
PB: predicated region body
PF: predicated region fallthrough
CT: control target
= control target key end

     0   :  { %s22_s0 = inlined_call_operand.vmem [shape: f32[7], index: 0, kind: input, shape index: {}]   ;;  %s23_s1 = inlined_call_operand.vmem [shape: f32[7,7], index: 1, kind: output, shape index: {}]  }
   0x1   :  { %v4_v0 = vld [vmem:[%s22_s0] ss:$0 sm:$0xff] }
   0x2   :  { %5 = vst [vmem:[%s23_s1] sm:$0xff] %v4_v0 }

// kernel: neg.2
= control target key start
LH: loop header
LB: loop body
LE: loop exit
PB: predicated region body
PF: predicated region fallthrough
CT: control target
= control target key end

     0   :  { %s24_s0 = inlined_call_operand.vmem [shape: f32[882], index: 0, kind: input, shape index: {}]   ;;  %s25_s1 = inlined_call_operand.vmem [shape: f32[882], index: 1, kind: output, shape index: {}]  }
   0x1   :  { %v2_v0 = vld [vmem:[%s24_s0] sm:$0x7f] }
   0x2   :  { %v5_v1 = vxor.u32 2147483648, %v2_v0 }
   0x4   :  { %7 = vst [vmem:[%s25_s1] sm:$0xff] %v5_v1 }

// kernel: single_stage_detector_forward.2
= control target key start
LH: loop header
LB: loop body
LE: loop exit
PB: predicated region body
PF: predicated region fallthrough
CT: control target
= control target key end

     0   :  { %s1101_s0 = inlined_call_operand.hbm [shape: f32[8,4], index: 0, kind: input, shape index: {}]   ;;  %s1102_s1 = inlined_call_operand.vmem [shape: f32[9,2], index: 1, kind: input, shape index: {}]   ;;  %s1103_s2 = inlined_call_operand.vmem [shape: f32[2,128], index: 2, kind: input, shape index: {}]   ;;  %s1104_s3 = inlined_call_operand.vmem [shape: f32[2,9,128], index: 3, kind: output, shape index: {0}]   ;;  %s1105_s4 = inlined_call_operand.vmem [shape: s32[2,9,128], index: 4, kind: output, shape index: {1}]  }
   0x1   :  { %1129 = sst [smem:[#allocation13_spill]] %s1104_s3 }
   0x2   :  { %1130 = sst [smem:[#allocation14_spill]] %s1105_s4 }
   0x3   :  { %10 = vsyncpa [#allocation3], 0  ;;  %s517_s17 = scalar_lea.hbm %s1101_s0, 128 }
   0x4   :  { %p518_p0 = scmp.ne.s32.totalorder %s1101_s0, %s517_s17  ;;  %p521_p1 = scmp.lt.u32.totalorder %s517_s17, %s1101_s0 }
   0x6   :  { %p523_p2 = pnand %p521_p1, %p518_p0 }
   0x8   :  { %526 = shalt.err (!%p523_p2)
}
   0x9   :  { %s529_s22 = smov [#allocation2]  }
   0xa   :  { %18 = dma.hbm_to_smem %s1101_s0, 128, %s529_s22, [#allocation3]  }
   0xb   :  { %527 = dma.done.wait [#allocation3], 128  }
   0xc   :  { %528 = vsyncadd [#allocation3], 4294967168 }
   0xd   :  { %26 = sfence }
   0xe   :  { %v27_v0 = vld [vmem:[%s1102_s1] sm:$0xff]  ;;  %v28_v1 = vld [vmem:[%s1102_s1 + $0x8] sm:$0x1]  ;;  %v530_v2 = vmov 1   ;;  %v1120_v3 = vmov 0   ;;  %s576_s0 = sld [smem:[#allocation2 + $0x1]] }
   0xf   :  { %483 = vset.pattern.permute.xlu1 %v530_v2  ;;  %482 = vset.pattern.permute.xlu0 %v1120_v3  ;;  %v31_v4 = vmul.f32 0.5, %v27_v0  ;;  %v32_v5 = vmul.f32 0.5, %v28_v1  ;;  %s578_s29 = sld [smem:[#allocation2 + $0x3]]  ;;  %s580_s30 = sld [smem:[#allocation2 + $0x81]]  ;;  %v635_v6 = vld [vmem:[%s1103_s2 + $0x1] ss:$0 sm:$0xff] }
  0x10   :  { %s582_s5 = sld [smem:[#allocation2 + $0x83]]  ;;  %s584_s1 = sld [smem:[#allocation2 + $0x101]]  ;;  %v664_v24 = vld [vmem:[%s1103_s2] ss:$0 sm:$0xff] }
  0x11   :  { %54 = vperm.xlu1 %483, %v31_v4   ;;  %39 = vperm.xlu0 %482, %v31_v4   ;;  %s586_s6 = sld [smem:[#allocation2 + $0x103]]  ;;  %s588_s7 = sld [smem:[#allocation2 + $0x181]] }
  0x12   :  { %s590_s8 = sld [smem:[#allocation2 + $0x183]]  ;;  %s592_s9 = sld [smem:[#allocation2 + $0x201]] }
  0x13   :  { %s594_s10 = sld [smem:[#allocation2 + $0x203]]  ;;  %s596_s11 = sld [smem:[#allocation2 + $0x281]] }
  0x14   :  { %s598_s12 = sld [smem:[#allocation2 + $0x283]]  ;;  %s600_s13 = sld [smem:[#allocation2 + $0x301]]  ;;  %v79_v7 = vstv %s576_s0 }
  0x15   :  { %58 = vperm.xlu1 %483, %v32_v5   ;;  %44 = vperm.xlu0 %482, %v32_v5   ;;  %s602_s14 = sld [smem:[#allocation2 + $0x303]]  ;;  %s604_s15 = sld [smem:[#allocation2 + $0x381]]  ;;  %v82_v8 = vstv %s578_s29  ;;  %v119_v9 = vstv %s580_s30 }
  0x16   :  { %s606_s16 = sld [smem:[#allocation2 + $0x383]]  ;;  %s608_s17 = sld [smem:[#allocation2]]  ;;  %v122_v10 = vstv %s582_s5  ;;  %v165_v11 = vstv %s584_s1 }
  0x17   :  { %1131 = sst [smem:[#allocation5_spill]] %s588_s7  ;;  %s610_s18 = sld [smem:[#allocation2 + $0x2]]  ;;  %v168_v12 = vstv %s586_s6  ;;  %v211_v13 = vstv %s588_s7 }
  0x18   :  { %1132 = sst [smem:[#allocation6_spill]] %s590_s8  ;;  %s612_s19 = sld [smem:[#allocation2 + $0x80]]  ;;  %v214_v14 = vstv %s590_s8  ;;  %v261_v16 = vstv %s592_s9 }
  0x19   :  { %484 = vset.pattern.permute.xlu0 %v530_v2  ;;  %1133 = sst [smem:[#allocation7_spill]] %s594_s10  ;;  %s616_s21 = sld [smem:[#allocation2 + $0x100]]  ;;  %v264_v17 = vstv %s594_s10  ;;  %v301_v18 = vstv %s596_s11 }
  0x1a   :  { %1134 = sst [smem:[#allocation8_spill]] %s596_s11  ;;  %s614_s20 = sld [smem:[#allocation2 + $0x82]]  ;;  %v304_v19 = vstv %s598_s12  ;;  %v347_v22 = vstv %s600_s13 }
  0x1b   :  { %s618_s22 = sld [smem:[#allocation2 + $0x102]]  ;;  %s620_s23 = sld [smem:[#allocation2 + $0x180]]  ;;  %v350_v23 = vstv %s602_s14  ;;  %v393_v25 = vstv %s604_s15 }
  0x1c   :  { %s622_s24 = sld [smem:[#allocation2 + $0x182]]  ;;  %s624_s25 = sld [smem:[#allocation2 + $0x200]]  ;;  %v1122_v26 = vstv %s606_s16  ;;  %v1123_v27 = vstv %s608_s17 }
  0x1d   :  { %s626_s26 = sld [smem:[#allocation2 + $0x202]]  ;;  %s628_s27 = sld [smem:[#allocation2 + $0x280]]  ;;  %v1124_v28 = vstv %s610_s18 }
  0x1e   :  { %s630_s28 = sld [smem:[#allocation2 + $0x282]]  ;;  %v1125_v29 = vstv %s612_s19  ;;  %s1166_s5 = sld [smem:[#allocation13_spill]] }
  0x1f   :  { %v1127_v31 = vstv %s616_s21  ;;  %s1167_s9 = sld [smem:[#allocation14_spill]] }
  0x20   :  { %v1126_v30 = vstv %s614_s20 }
  0x21   :  { %1135 = sst [smem:[#allocation9_spill]] %s620_s23  ;;  %s637_s23 = sld [smem:[#allocation2 + $0x300]]  ;;  %v1128_v32 = vstv %s618_s22 }
  0x22   :  { %1136 = sst [smem:[#allocation10_spill]] %s622_s24  ;;  %s639_s24 = sld [smem:[#allocation2 + $0x302]]  ;;  %v253_v36 = vstv %s624_s25 }
  0x23   :  { %1137 = sst [smem:[#allocation11_spill]] %s628_s27  ;;  %s645_s27 = sld [smem:[#allocation2 + $0x380]]  ;;  %v256_v37 = vstv %s626_s26 }
  0x24   :  { %1138 = sst [smem:[#allocation12_spill]] %s630_s28  ;;  %s647_s28 = sld [smem:[#allocation2 + $0x382]] }
  0x25   :  { %s1139_s3 = sld [smem:[#allocation9_spill]]  ;;  %s1140_s4 = sld [smem:[#allocation10_spill]] }
  0x26   :  { %s1141_s10 = sld [smem:[#allocation11_spill]]  ;;  %s1142_s11 = sld [smem:[#allocation12_spill]] }
  0x2b   :  { %v203_v34 = vstv %s1139_s3  ;;  %v206_v35 = vstv %s1140_s4 }
  0x2c   :  { %v293_v40 = vstv %s1141_s10  ;;  %v296_v41 = vstv %s1142_s11 }
  0x90   :  { %v55_v15 = vpop.permute.xlu1 %54  ;;  %v40_v33 = vpop.permute.xlu0 %39 }
  0x91   :  { %v61_v20 = vsub.f32 %v635_v6, %v55_v15  ;;  %v65_v21 = vadd.f32 %v635_v6, %v55_v15  ;;  %v693_v46 = vsub.f32 %v664_v24, %v40_v33  ;;  %v696_v47 = vadd.f32 %v664_v24, %v40_v33 }
  0x93   :  { %v680_v38 = vsub.f32 %v65_v21, %v79_v7  ;;  %v684_v39 = vsub.f32 %v82_v8, %v61_v20  ;;  %v700_v48 = vsub.f32 %v65_v21, %v119_v9  ;;  %v704_v49 = vsub.f32 %v122_v10, %v61_v20 }
  0x94   :  { %v708_v50 = vsub.f32 %v65_v21, %v165_v11  ;;  %v712_v51 = vsub.f32 %v168_v12, %v61_v20  ;;  %v716_v52 = vsub.f32 %v65_v21, %v211_v13  ;;  %v720_v53 = vsub.f32 %v214_v14, %v61_v20  ;;  %v59_v54 = vpop.permute.xlu1 %58 }
  0x95   :  { %v85_v55 = vmin.f32 %v680_v38, %v684_v39  ;;  %v89_v56 = vmax.f32 %v680_v38, %v684_v39  ;;  %v728_v57 = vsub.f32 %v65_v21, %v261_v16  ;;  %v732_v58 = vsub.f32 %v264_v17, %v61_v20 }
  0x96   :  { %v736_v59 = vsub.f32 %v65_v21, %v301_v18  ;;  %v740_v60 = vsub.f32 %v304_v19, %v61_v20  ;;  %v744_v61 = vsub.f32 %v65_v21, %v347_v22  ;;  %v748_v62 = vsub.f32 %v350_v23, %v61_v20 }
  0x97   :  { %v125_v63 = vmin.f32 %v700_v48, %v704_v49  ;;  %v129_v0 = vmax.f32 %v700_v48, %v704_v49  ;;  %v755_v1 = vsub.f32 %v635_v6, %v59_v54  ;;  %v758_v2 = vadd.f32 %v635_v6, %v59_v54 }
  0x98   :  { %v175_v5 = vmax.f32 %v708_v50, %v712_v51  ;;  %v221_v33 = vmax.f32 %v716_v52, %v720_v53  ;;  %v774_v3 = vsub.f32 %v65_v21, %v393_v25  ;;  %v778_v45 = vsub.f32 %v1122_v26, %v61_v20 }
  0x99   :  { %v791_v20 = vsub.f32 %v758_v2, %v79_v7  ;;  %v796_v15 = vsub.f32 %v82_v8, %v755_v1  ;;  %v801_v26 = vsub.f32 %v758_v2, %v119_v9  ;;  %v806_v6 = vsub.f32 %v122_v10, %v755_v1 }
  0x9a   :  { %v811_v21 = vsub.f32 %v758_v2, %v165_v11  ;;  %v816_v7 = vsub.f32 %v168_v12, %v755_v1  ;;  %v821_v8 = vsub.f32 %v758_v2, %v211_v13  ;;  %v826_v9 = vsub.f32 %v214_v14, %v755_v1 }
  0x9b   :  { %v72_v44 = vsub.f32 %v696_v47, %v1123_v27  ;;  %v75_v12 = vsub.f32 %v1124_v28, %v693_v46  ;;  %v112_v13 = vsub.f32 %v696_v47, %v1125_v29  ;;  %v115_v14 = vsub.f32 %v1126_v30, %v693_v46 }
  0x9c   :  { %v158_v10 = vsub.f32 %v696_v47, %v1127_v31  ;;  %v161_v43 = vsub.f32 %v1128_v32, %v693_v46  ;;  %v869_v28 = vsub.f32 %v758_v2, %v261_v16  ;;  %v874_v30 = vsub.f32 %v264_v17, %v755_v1 }
  0x9d   :  { %v77_v29 = vmin.f32 %v72_v44, %v75_v12  ;;  %v87_v27 = vmax.f32 %v72_v44, %v75_v12  ;;  %vm91_vm0 = vcmp.lt.f32.partialorder %v72_v44, 0.0  ;;  %v117_v31 = vmin.f32 %v112_v13, %v115_v14 }
  0x9e   :  { %v127_v42 = vmax.f32 %v112_v13, %v115_v14  ;;  %vm131_vm1 = vcmp.lt.f32.partialorder %v112_v13, 0.0  ;;  %v163_v32 = vmin.f32 %v158_v10, %v161_v43  ;;  %v173_v54 = vmax.f32 %v158_v10, %v161_v43 }
  0x9f   :  { %v93_v11 = vsel %vm91_vm0, 0.0, %v77_v29  ;;  %v101_v4 = vmul.f32 %v89_v56, %v87_v27  ;;  %v879_v16 = vsub.f32 %v758_v2, %v301_v18  ;;  %v884_v44 = vsub.f32 %v304_v19, %v755_v1 }
  0xa0   :  { %v141_v17 = vmul.f32 %v129_v0, %v127_v42  ;;  %vm177_vm2 = vcmp.lt.f32.partialorder %v158_v10, 0.0  ;;  %v889_v27 = vsub.f32 %v758_v2, %v347_v22  ;;  %v894_v29 = vsub.f32 %v350_v23, %v755_v1 }
  0xa1   :  { %vm95_vm3 = vcmp.lt.f32.partialorder %v75_v12, 0.0  ;;  %485 = vrcp.f32 %v101_v4  ;;  %v133_v56 = vsel %vm131_vm1, 0.0, %v117_v31  ;;  %v187_v19 = vmul.f32 %v175_v5, %v173_v54 }
  0xa2   :  { %v97_v18 = vsel %vm95_vm3, 0.0, %v93_v11  ;;  %487 = vrcp.f32 %v141_v17  ;;  %v179_v13 = vsel %vm177_vm2, 0.0, %v163_v32  ;;  %v204_v42 = vsub.f32 %v696_v47, %v203_v34 }
  0xa3   :  { %v207_v0 = vsub.f32 %v206_v35, %v693_v46  ;;  %v254_v22 = vsub.f32 %v696_v47, %v253_v36  ;;  %vm135_vm4 = vcmp.lt.f32.partialorder %v115_v14, 0.0  ;;  %489 = vrcp.f32 %v187_v19 }
  0xa4   :  { %v257_v23 = vsub.f32 %v256_v37, %v693_v46  ;;  %v294_v31 = vsub.f32 %v696_v47, %v293_v40  ;;  %v914_v32 = vsub.f32 %v758_v2, %v393_v25  ;;  %v137_v4 = vsel %vm135_vm4, 0.0, %v133_v56 }
  0xa5   :  { %vm181_vm5 = vcmp.lt.f32.partialorder %v161_v43, 0.0  ;;  %v219_v5 = vmax.f32 %v204_v42, %v207_v0  ;;  %v99_v54 = vmul.f32 %v97_v18, %v85_v55  ;;  %v209_v11 = vmin.f32 %v204_v42, %v207_v0 }
  0xa6   :  { %v183_v10 = vsel %vm181_vm5, 0.0, %v179_v13  ;;  %v269_v12 = vmax.f32 %v254_v22, %v257_v23  ;;  %vm223_vm6 = vcmp.lt.f32.partialorder %v204_v42, 0.0  ;;  %v259_v17 = vmin.f32 %v254_v22, %v257_v23 }
  0xa7   :  { %v233_v14 = vmul.f32 %v221_v33, %v219_v5  ;;  %v297_v25 = vsub.f32 %v296_v41, %v693_v46  ;;  %v139_v43 = vmul.f32 %v137_v4, %v125_v63  ;;  %vm273_vm7 = vcmp.lt.f32.partialorder %v254_v22, 0.0 }
  0xa8   :  { %v1148_v38 = vmax.f32 %v728_v57, %v732_v58  ;;  %vm313_vm8 = vcmp.lt.f32.partialorder %v294_v31, 0.0  ;;  %v1149_v55 = vmin.f32 %v708_v50, %v712_v51  ;;  %v1150_v18 = vstv %s637_s23 }
  0xa9   :  { %491 = vrcp.f32 %v233_v14  ;;  %v299_v33 = vmin.f32 %v294_v31, %v297_v25  ;;  %v340_v56 = vsub.f32 %v696_v47, %v1150_v18  ;;  %v225_v48 = vsel %vm223_vm6, 0.0, %v209_v11 }
  0xaa   :  { %v283_v39 = vmul.f32 %v1148_v38, %v269_v12  ;;  %v185_v2 = vmul.f32 %v183_v10, %v1149_v55  ;;  %vm227_vm9 = vcmp.lt.f32.partialorder %v207_v0, 0.0  ;;  %v309_v49 = vmax.f32 %v294_v31, %v297_v25 }
  0xab   :  { %v486_v63 = vpop.eup %485  ;;  %v275_v19 = vsel %vm273_vm7, 0.0, %v259_v17  ;;  %v315_v13 = vsel %vm313_vm8, 0.0, %v299_v33  ;;  %v1151_v42 = vstv %s639_s24  ;;  %v1152_v4 = vstv %s645_s27 }
  0xac   :  { %493 = vrcp.f32 %v283_v39  ;;  %v343_v22 = vsub.f32 %v1151_v42, %v693_v46  ;;  %v386_v50 = vsub.f32 %v696_v47, %v1152_v4  ;;  %v488_v51 = vpop.eup %487  ;;  %v104_v5 = vmul.f32 %v486_v63, %v99_v54 }
  0xad   :  { %vm277_vm10 = vcmp.lt.f32.partialorder %v257_v23, 0.0  ;;  %v1153_v10 = vmax.f32 %v736_v59, %v740_v60  ;;  %v1154_v0 = vstv %s647_s28  ;;  %v144_v12 = vmul.f32 %v488_v51, %v139_v43  ;;  %v490_v38 = vpop.eup %489 }
  0xae   :  { %v389_v31 = vsub.f32 %v1154_v0, %v693_v46  ;;  %v229_v14 = vsel %vm227_vm9, 0.0, %v225_v48  ;;  %vm317_vm11 = vcmp.lt.f32.partialorder %v297_v25, 0.0  ;;  %v355_v17 = vmax.f32 %v340_v56, %v343_v22  ;;  %v45_v48 = vpop.permute.xlu0 %44 }
  0xaf   :  { %v323_v11 = vmul.f32 %v1153_v10, %v309_v49  ;;  %v279_v39 = vsel %vm277_vm10, 0.0, %v275_v19  ;;  %v319_v55 = vsel %vm317_vm11, 0.0, %v315_v13  ;;  %vm147_vm12 = vcmp.gt.f32.partialorder %v144_v12, %v104_v5 }
  0xb0   :  { %v401_v47 = vmax.f32 %v386_v50, %v389_v31  ;;  %v190_v54 = vmul.f32 %v490_v38, %v185_v2  ;;  %v345_v23 = vmin.f32 %v340_v56, %v343_v22  ;;  %v1155_v33 = vmax.f32 %v744_v61, %v748_v62 }
  0xb1   :  { %495 = vrcp.f32 %v323_v11  ;;  %v1156_v49 = vstv %s606_s16  ;;  %v149_v46 = vsel %vm147_vm12, %v144_v12, %v104_v5  ;;  %v1157_v25 = vmin.f32 %v716_v52, %v720_v53 }
  0xb2   :  { %v369_v18 = vmul.f32 %v1155_v33, %v355_v17  ;;  %v955_v63 = vsub.f32 %v1156_v49, %v755_v1  ;;  %vm359_vm13 = vcmp.lt.f32.partialorder %v340_v56, 0.0  ;;  %v1158_v19 = vmov 0  }
  0xb3   :  { %v231_v43 = vmul.f32 %v229_v14, %v1157_v25  ;;  %v151_v13 = vsel %vm147_vm12, 1, %v1158_v19  ;;  %vm193_vm14 = vcmp.gt.f32.partialorder %v190_v54, %v149_v46  ;;  %v391_v2 = vmin.f32 %v386_v50, %v389_v31  ;;  %v492_v56 = vpop.eup %491 }
  0xb4   :  { %497 = vrcp.f32 %v369_v18  ;;  %v1159_v42 = vmin.f32 %v728_v57, %v732_v58  ;;  %v1160_v1 = vmin.f32 %v736_v59, %v740_v60  ;;  %vm405_vm15 = vcmp.lt.f32.partialorder %v386_v50, 0.0 }
  0xb5   :  { %v1161_v52 = vmax.f32 %v774_v3, %v778_v45  ;;  %v195_v5 = vsel %vm193_vm14, %v190_v54, %v149_v46  ;;  %v361_v10 = vsel %vm359_vm13, 0.0, %v345_v23  ;;  %v971_v11 = vsub.f32 %v664_v24, %v45_v48 }
  0xb6   :  { %v281_v4 = vmul.f32 %v279_v39, %v1159_v42  ;;  %v321_v51 = vmul.f32 %v319_v55, %v1160_v1  ;;  %v974_v57 = vadd.f32 %v664_v24, %v45_v48  ;;  %v494_v58 = vpop.eup %493  ;;  %v197_v59 = vsel %vm193_vm14, 2, %v151_v13 }
  0xb7   :  { %v415_v53 = vmul.f32 %v1161_v52, %v401_v47  ;;  %v236_v60 = vmul.f32 %v492_v56, %v231_v43  ;;  %vm363_vm0 = vcmp.lt.f32.partialorder %v343_v22, 0.0  ;;  %v407_v50 = vsel %vm405_vm15, 0.0, %v391_v2 }
  0xb8   :  { %v1162_v0 = vstv %s608_s17  ;;  %v1163_v14 = vstv %s610_s18  ;;  %v1164_v38 = vstv %s612_s19  ;;  %v365_v55 = vsel %vm363_vm0, 0.0, %v361_v10 }
  0xb9   :  { %499 = vrcp.f32 %v415_v53  ;;  %v73_v12 = vsub.f32 %v974_v57, %v1162_v0  ;;  %v76_v17 = vsub.f32 %v1163_v14, %v971_v11  ;;  %v113_v39 = vsub.f32 %v974_v57, %v1164_v38 }
  0xba   :  { %vm239_vm1 = vcmp.gt.f32.partialorder %v236_v60, %v195_v5  ;;  %vm409_vm2 = vcmp.lt.f32.partialorder %v389_v31, 0.0  ;;  %v1165_v24 = vstv %s614_s20  ;;  %v286_v23 = vmul.f32 %v494_v58, %v281_v4 }
  0xbb   :  { %v116_v47 = vsub.f32 %v1165_v24, %v971_v11  ;;  %v241_v22 = vsel %vm239_vm1, %v236_v60, %v195_v5  ;;  %v243_v54 = vsel %vm239_vm1, 3, %v197_v59  ;;  %v88_v33 = vmax.f32 %v73_v12, %v76_v17  ;;  %v496_v18 = vpop.eup %495 }
  0xbc   :  { %v272_v49 = vmax.f32 %v869_v28, %v874_v30  ;;  %245 = vst [vmem:[%s1166_s5] sm:$0xff] %v241_v22  ;;  %247 = vst [vmem:[%s1167_s9] sm:$0xff] %v243_v54  ;;  %v411_v31 = vsel %vm409_vm2, 0.0, %v407_v50  ;;  %v1168_v25 = vstv %s616_s21  ;;  %v326_v48 = vmul.f32 %v496_v18, %v321_v51 }
  0xbd   :  { %v128_v46 = vmax.f32 %v113_v39, %v116_v47  ;;  %v159_v43 = vsub.f32 %v974_v57, %v1168_v25  ;;  %v78_v13 = vmin.f32 %v73_v12, %v76_v17  ;;  %v1169_v2 = vmax.f32 %v791_v20, %v796_v15 }
  0xbe   :  { %v1170_v4 = vstv %s618_s22  ;;  %v1171_v52 = vmin.f32 %v744_v61, %v748_v62  ;;  %vm92_vm3 = vcmp.lt.f32.partialorder %v73_v12, 0.0  ;;  %v118_v56 = vmin.f32 %v113_v39, %v116_v47  ;;  %v498_v58 = vpop.eup %497 }
  0xbf   :  { %v102_v42 = vmul.f32 %v1169_v2, %v88_v33  ;;  %v162_v1 = vsub.f32 %v1170_v4, %v971_v11  ;;  %v1172_v5 = vmax.f32 %v801_v26, %v806_v6  ;;  %v312_v51 = vmax.f32 %v879_v16, %v884_v44 }
  0xc0   :  { %v367_v53 = vmul.f32 %v365_v55, %v1171_v52  ;;  %vm329_vm4 = vcmp.gt.f32.partialorder %v326_v48, %v286_v23  ;;  %vm132_vm5 = vcmp.lt.f32.partialorder %v113_v39, 0.0  ;;  %v1173_v62 = vmin.f32 %v774_v3, %v778_v45 }
  0xc1   :  { %v142_v10 = vmul.f32 %v1172_v5, %v128_v46  ;;  %501 = vrcp.f32 %v102_v42  ;;  %v331_v59 = vsel %vm329_vm4, %v326_v48, %v286_v23  ;;  %v333_v60 = vsel %vm329_vm4, 1, %v1158_v19 }
  0xc2   :  { %v372_v61 = vmul.f32 %v498_v58, %v367_v53  ;;  %v413_v50 = vmul.f32 %v411_v31, %v1173_v62  ;;  %v94_v0 = vsel %vm92_vm3, 0.0, %v78_v13  ;;  %vm96_vm6 = vcmp.lt.f32.partialorder %v76_v17, 0.0 }
  0xc3   :  { %503 = vrcp.f32 %v142_v10  ;;  %v174_v12 = vmax.f32 %v159_v43, %v162_v1  ;;  %v500_v14 = vpop.eup %499  ;;  %v134_v38 = vsel %vm132_vm5, 0.0, %v118_v56  ;;  %v205_v55 = vsub.f32 %v974_v57, %v203_v34 }
  0xc4   :  { %vm375_vm7 = vcmp.gt.f32.partialorder %v372_v61, %v331_v59  ;;  %v208_v39 = vsub.f32 %v206_v35, %v971_v11  ;;  %v418_v54 = vmul.f32 %v500_v14, %v413_v50  ;;  %v164_v23 = vmin.f32 %v159_v43, %v162_v1 }
  0xc5   :  { %v377_v24 = vsel %vm375_vm7, %v372_v61, %v331_v59  ;;  %v379_v22 = vsel %vm375_vm7, 2, %v333_v60  ;;  %vm178_vm8 = vcmp.lt.f32.partialorder %v159_v43, 0.0  ;;  %v1174_v3 = vmax.f32 %v811_v21, %v816_v7 }
  0xc6   :  { %v210_v33 = vmin.f32 %v205_v55, %v208_v39  ;;  %v220_v18 = vmax.f32 %v205_v55, %v208_v39  ;;  %vm421_vm9 = vcmp.gt.f32.partialorder %v418_v54, %v377_v24  ;;  %v98_v34 = vsel %vm96_vm6, 0.0, %v94_v0 }
  0xc7   :  { %v188_v45 = vmul.f32 %v1174_v3, %v174_v12  ;;  %vm136_vm10 = vcmp.lt.f32.partialorder %v116_v47, 0.0  ;;  %vm224_vm11 = vcmp.lt.f32.partialorder %v205_v55, 0.0  ;;  %v423_v35 = vsel %vm421_vm9, %v418_v54, %v377_v24 }
  0xc8   :  { %v425_v31 = vsel %vm421_vm9, 3, %v379_v22  ;;  %v138_v46 = vsel %vm136_vm10, 0.0, %v134_v38  ;;  %475 = vst [vmem:[%s1166_s5 + $0x10] sm:$0xff] %v423_v35  ;;  %v180_v25 = vsel %vm178_vm8, 0.0, %v164_v23  ;;  %v1175_v17 = vmax.f32 %v821_v8, %v826_v9 }
  0xc9   :  { %505 = vrcp.f32 %v188_v45  ;;  %477 = vst [vmem:[%s1167_s9 + $0x10] sm:$0xff] %v425_v31  ;;  %v255_v47 = vsub.f32 %v974_v57, %v253_v36  ;;  %v258_v48 = vsub.f32 %v256_v37, %v971_v11  ;;  %v1176_v13 = vmin.f32 %v791_v20, %v796_v15 }
  0xca   :  { %v234_v43 = vmul.f32 %v1175_v17, %v220_v18  ;;  %v226_v42 = vsel %vm224_vm11, 0.0, %v210_v33  ;;  %v295_v4 = vsub.f32 %v974_v57, %v293_v40  ;;  %v298_v52 = vsub.f32 %v296_v41, %v971_v11 }
  0xcb   :  { %v100_v2 = vmul.f32 %v98_v34, %v1176_v13  ;;  %v502_v53 = vpop.eup %501  ;;  %v1177_v56 = vmin.f32 %v801_v26, %v806_v6  ;;  %vm182_vm12 = vcmp.lt.f32.partialorder %v162_v1, 0.0  ;;  %v270_v37 = vmax.f32 %v255_v47, %v258_v48 }
  0xcc   :  { %507 = vrcp.f32 %v234_v43  ;;  %v184_v15 = vsel %vm182_vm12, 0.0, %v180_v25  ;;  %vm228_vm13 = vcmp.lt.f32.partialorder %v208_v39, 0.0  ;;  %v310_v20 = vmax.f32 %v295_v4, %v298_v52 }
  0xcd   :  { %v140_v36 = vmul.f32 %v138_v46, %v1177_v56  ;;  %v106_v5 = vmul.f32 %v502_v53, %v100_v2  ;;  %v504_v10 = vpop.eup %503  ;;  %v230_v58 = vsel %vm228_vm13, 0.0, %v226_v42  ;;  %v260_v59 = vmin.f32 %v255_v47, %v258_v48 }
  0xce   :  { %v284_v40 = vmul.f32 %v272_v49, %v270_v37  ;;  %v1178_v41 = vstv %s637_s23  ;;  %vm274_vm14 = vcmp.lt.f32.partialorder %v255_v47, 0.0  ;;  %v300_v6 = vmin.f32 %v295_v4, %v298_v52 }
  0xcf   :  { %v341_v60 = vsub.f32 %v974_v57, %v1178_v41  ;;  %v146_v26 = vmul.f32 %v504_v10, %v140_v36  ;;  %v324_v1 = vmul.f32 %v312_v51, %v310_v20  ;;  %v358_v61 = vmax.f32 %v889_v27, %v894_v29 }
  0xd0   :  { %509 = vrcp.f32 %v284_v40  ;;  %vm314_vm15 = vcmp.lt.f32.partialorder %v295_v4, 0.0  ;;  %v1179_v62 = vstv %s639_s24  ;;  %v268_v49 = vmin.f32 %v869_v28, %v874_v30 }
  0xd1   :  { %v344_v50 = vsub.f32 %v1179_v62, %v971_v11  ;;  %v404_v0 = vmax.f32 %v914_v32, %v955_v63  ;;  %vm148_vm0 = vcmp.gt.f32.partialorder %v146_v26, %v106_v5  ;;  %511 = vrcp.f32 %v324_v1 }
  0xd2   :  { %v1180_v51 = vmin.f32 %v811_v21, %v816_v7  ;;  %v1181_v14 = vmin.f32 %v821_v8, %v826_v9  ;;  %v276_v55 = vsel %vm274_vm14, 0.0, %v260_v59  ;;  %v150_v22 = vsel %vm148_vm0, %v146_v26, %v106_v5 }
  0xd3   :  { %v356_v39 = vmax.f32 %v341_v60, %v344_v50  ;;  %v506_v24 = vpop.eup %505  ;;  %v316_v54 = vsel %vm314_vm15, 0.0, %v300_v6  ;;  %v1182_v23 = vstv %s645_s27  ;;  %v1183_v30 = vstv %s647_s28 }
  0xd4   :  { %v186_v12 = vmul.f32 %v184_v15, %v1180_v51  ;;  %v232_v38 = vmul.f32 %v230_v58, %v1181_v14  ;;  %v387_v28 = vsub.f32 %v974_v57, %v1182_v23  ;;  %v390_v3 = vsub.f32 %v1183_v30, %v971_v11 }
  0xd5   :  { %v152_v45 = vsel %vm148_vm0, 1, %v1158_v19  ;;  %vm278_vm1 = vcmp.lt.f32.partialorder %v258_v48, 0.0  ;;  %v370_v21 = vmul.f32 %v358_v61, %v356_v39  ;;  %vm318_vm2 = vcmp.lt.f32.partialorder %v298_v52, 0.0 }
  0xd6   :  { %v192_v33 = vmul.f32 %v506_v24, %v186_v12  ;;  %v280_v7 = vsel %vm278_vm1, 0.0, %v276_v55  ;;  %v346_v8 = vmin.f32 %v341_v60, %v344_v50  ;;  %v402_v9 = vmax.f32 %v387_v28, %v390_v3  ;;  %v508_v18 = vpop.eup %507 }
  0xd7   :  { %v320_v34 = vsel %vm318_vm2, 0.0, %v316_v54  ;;  %vm360_vm4 = vcmp.lt.f32.partialorder %v341_v60, 0.0  ;;  %513 = vrcp.f32 %v370_v21  ;;  %v308_v57 = vmin.f32 %v879_v16, %v884_v44 }
  0xd8   :  { %vm194_vm3 = vcmp.gt.f32.partialorder %v192_v33, %v150_v22  ;;  %v238_v11 = vmul.f32 %v508_v18, %v232_v38  ;;  %v282_v46 = vmul.f32 %v280_v7, %v268_v49  ;;  %v416_v25 = vmul.f32 %v404_v0, %v402_v9 }
  0xd9   :  { %v196_v35 = vsel %vm194_vm3, %v192_v33, %v150_v22  ;;  %v198_v31 = vsel %vm194_vm3, 2, %v152_v45  ;;  %v322_v17 = vmul.f32 %v320_v34, %v308_v57  ;;  %v362_v43 = vsel %vm360_vm4, 0.0, %v346_v8 }
  0xda   :  { %vm240_vm5 = vcmp.gt.f32.partialorder %v238_v11, %v196_v35  ;;  %v392_v47 = vmin.f32 %v387_v28, %v390_v3  ;;  %v510_v48 = vpop.eup %509  ;;  %vm406_vm6 = vcmp.lt.f32.partialorder %v387_v28, 0.0  ;;  %515 = vrcp.f32 %v416_v25 }
  0xdb   :  { %v242_v13 = vsel %vm240_vm5, %v238_v11, %v196_v35  ;;  %v244_v2 = vsel %vm240_vm5, 3, %v198_v31  ;;  %v512_v42 = vpop.eup %511  ;;  %v288_v16 = vmul.f32 %v510_v48, %v282_v46  ;;  %vm364_vm7 = vcmp.lt.f32.partialorder %v344_v50, 0.0 }
  0xdc   :  { %246 = vst [vmem:[%s1166_s5 + $0x8] sm:$0x1] %v242_v13  ;;  %248 = vst [vmem:[%s1167_s9 + $0x8] sm:$0x1] %v244_v2  ;;  %v328_v44 = vmul.f32 %v512_v42, %v322_v17  ;;  %v366_v4 = vsel %vm364_vm7, 0.0, %v362_v43  ;;  %v354_v52 = vmin.f32 %v889_v27, %v894_v29  ;;  %v408_v53 = vsel %vm406_vm6, 0.0, %v392_v47 }
  0xdd   :  { %vm410_vm9 = vcmp.lt.f32.partialorder %v390_v3, 0.0  ;;  %v400_v15 = vmin.f32 %v914_v32, %v955_v63 }
  0xde   :  { %vm330_vm8 = vcmp.gt.f32.partialorder %v328_v44, %v288_v16  ;;  %v368_v56 = vmul.f32 %v366_v4, %v354_v52  ;;  %v412_v5 = vsel %vm410_vm9, 0.0, %v408_v53 }
  0xdf   :  { %v332_v37 = vsel %vm330_vm8, %v328_v44, %v288_v16  ;;  %v334_v10 = vsel %vm330_vm8, 1, %v1158_v19  ;;  %v414_v58 = vmul.f32 %v412_v5, %v400_v15 }
  0xe1   :  { %v514_v36 = vpop.eup %513 }
  0xe2   :  { %v374_v20 = vmul.f32 %v514_v36, %v368_v56 }
  0xe4   :  { %vm376_vm10 = vcmp.gt.f32.partialorder %v374_v20, %v332_v37  ;;  %v516_v59 = vpop.eup %515 }
  0xe5   :  { %v378_v40 = vsel %vm376_vm10, %v374_v20, %v332_v37  ;;  %v380_v41 = vsel %vm376_vm10, 2, %v334_v10  ;;  %v420_v60 = vmul.f32 %v516_v59, %v414_v58 }
  0xe7   :  { %vm422_vm11 = vcmp.gt.f32.partialorder %v420_v60, %v378_v40 }
  0xe8   :  { %v424_v27 = vsel %vm422_vm11, %v420_v60, %v378_v40  ;;  %v426_v29 = vsel %vm422_vm11, 3, %v380_v41 }
  0xe9   :  { %476 = vst [vmem:[%s1166_s5 + $0x18] sm:$0x1] %v424_v27  ;;  %478 = vst [vmem:[%s1167_s9 + $0x18] sm:$0x1] %v426_v29 }
  0xea   :  { %441 = vsyncpa [#allocation3], 1 }

// kernel: single_stage_detector_forward.3
= control target key start
LH: loop header
LB: loop body
LE: loop exit
PB: predicated region body
PF: predicated region fallthrough
CT: control target
= control target key end

     0   :  { %14 = vsyncpa [#allocation3], 0  ;;  %s1874_s0 = inlined_call_operand.hbm [shape: bf16[128,8], index: 0, kind: input, shape index: {}]   ;;  %s1875_s1 = inlined_call_operand.hbm [shape: bf16[8,128], index: 1, kind: input, shape index: {}]   ;;  %s1876_s2 = inlined_call_operand.hbm [shape: f32[1,128], index: 2, kind: input, shape index: {}]   ;;  %s1877_s3 = inlined_call_operand.hbm [shape: bf16[128,128], index: 3, kind: input, shape index: {}]   ;;  %s1878_s4 = inlined_call_operand.hbm [shape: f32[1,128], index: 4, kind: input, shape index: {}]   ;;  %s1879_s5 = inlined_call_operand.hbm [shape: bf16[128,128], index: 5, kind: input, shape index: {}]   ;;  %s1880_s6 = inlined_call_operand.hbm [shape: f32[1,128], index: 6, kind: input, shape index: {}]   ;;  %s1881_s7 = inlined_call_operand.hbm [shape: f32[1,128], index: 7, kind: input, shape index: {}]   ;;  %s1882_s8 = inlined_call_operand.hbm [shape: f32[1,128], index: 8, kind: input, shape index: {}]   ;;  %s1883_s9 = inlined_call_operand.hbm [shape: f32[128,128], index: 9, kind: output, shape index: {}]  }
   0x1   :  { %15 = vsyncpa [#allocation6], 0 }
   0x2   :  { %16 = vsyncpa [#allocation9], 0 }
   0x3   :  { %17 = vsyncpa [#allocation12], 0 }
   0x4   :  { %18 = vsyncpa [#allocation15], 0 }
   0x5   :  { %19 = vsyncpa [#allocation4], 0  ;;  %s1510_s30 = smov [#allocation5]   ;;  %s1278_s13 = scalar_lea.hbm %s1875_s1, 64 }
   0x6   :  { %s38_s10 = sshll.u32 %s1510_s30, 4  ;;  %p1279_p0 = scmp.ne.s32.totalorder %s1875_s1, %s1278_s13  ;;  %s39_s10 = int_to_ptr.vmem [resolvable:$true] %s38_s10 }
   0x7   :  { %p1282_p1 = scmp.lt.u32.totalorder %s1278_s13, %s1875_s1 }
   0x9   :  { %p1284_p2 = pnand %p1282_p1, %p1279_p0 }
   0xb   :  { %1287 = shalt.err (!%p1284_p2)
}
   0xc   :  { %s1288_s18 = scalar_lea.vmem %s39_s10, 64  ;;  %p1293_p4 = scmp.lt.s32.totalorder %s39_s10, %s39_s10 }
   0xd   :  { %p1289_p3 = scmp.ne.s32.totalorder %s39_s10, %s1288_s18  ;;  %p1294_p5 = scmp.lt.s32.totalorder %s1288_s18, %s1288_s18 }
   0xf   :  { %p1295_p6 = por %p1294_p5, %p1293_p4 }
  0x11   :  { %p1296_p7 = pnand %p1295_p6, %p1289_p3 }
  0x13   :  { %1299 = shalt.err (!%p1296_p7)
}
  0x14   :  { %41 = dma.hbm_to_vmem [thread:$0]  %s1875_s1, 64, %s39_s10, [#allocation6]  }
  0x15   :  { %s1511_s21 = smov [#allocation8]   ;;  %s1512_s23 = smov [#allocation11]  }
  0x16   :  { %s57_s22 = sshll.u32 %s1511_s21, 4  ;;  %s79_s24 = sshll.u32 %s1512_s23, 4  ;;  %s58_s22 = int_to_ptr.vmem [resolvable:$true] %s57_s22  ;;  %s80_s24 = int_to_ptr.vmem [resolvable:$true] %s79_s24 }
  0x17   :  { %s1300_s27 = scalar_lea.hbm %s1877_s3, 1024 }
  0x18   :  { %p1301_p8 = scmp.ne.s32.totalorder %s1877_s3, %s1300_s27  ;;  %p1304_p9 = scmp.lt.u32.totalorder %s1300_s27, %s1877_s3 }
  0x1a   :  { %p1306_p10 = pnand %p1304_p9, %p1301_p8 }
  0x1c   :  { %1309 = shalt.err (!%p1306_p10)
}
  0x1d   :  { %s1310_s1 = scalar_lea.vmem %s58_s22, 1024  ;;  %p1315_p12 = scmp.lt.s32.totalorder %s58_s22, %s58_s22 }
  0x1e   :  { %p1311_p11 = scmp.ne.s32.totalorder %s58_s22, %s1310_s1  ;;  %p1316_p13 = scmp.lt.s32.totalorder %s1310_s1, %s1310_s1 }
  0x20   :  { %p1317_p0 = por %p1316_p13, %p1315_p12 }
  0x22   :  { %p1318_p1 = pnand %p1317_p0, %p1311_p11 }
  0x24   :  { %1321 = shalt.err (!%p1318_p1)
}
  0x25   :  { %s1513_s10 = smov 64   ;;  %s1514_s12 = smov 4  }
  0x26   :  { %63 = dma.hbm_to_vmem [thread:$0]  %s1877_s3, 1024, %s58_s22, [#allocation9], %s1513_s10, %s1513_s10, %s1514_s12  }
  0x27   :  { %s1322_s17 = scalar_lea.hbm %s1879_s5, 1024 }
  0x28   :  { %p1323_p2 = scmp.ne.s32.totalorder %s1879_s5, %s1322_s17  ;;  %p1326_p3 = scmp.lt.u32.totalorder %s1322_s17, %s1879_s5 }
  0x2a   :  { %p1328_p4 = pnand %p1326_p3, %p1323_p2 }
  0x2c   :  { %1331 = shalt.err (!%p1328_p4)
}
  0x2d   :  { %s1332_s23 = scalar_lea.vmem %s80_s24, 1024  ;;  %p1337_p6 = scmp.lt.s32.totalorder %s80_s24, %s80_s24 }
  0x2e   :  { %p1333_p5 = scmp.ne.s32.totalorder %s80_s24, %s1332_s23  ;;  %p1338_p7 = scmp.lt.s32.totalorder %s1332_s23, %s1332_s23 }
  0x30   :  { %p1339_p8 = por %p1338_p7, %p1337_p6 }
  0x32   :  { %p1340_p9 = pnand %p1339_p8, %p1333_p5 }
  0x34   :  { %1343 = shalt.err (!%p1340_p9)
}
  0x35   :  { %85 = dma.hbm_to_vmem [thread:$0]  %s1879_s5, 1024, %s80_s24, [#allocation12], %s1513_s10, %s1513_s10, %s1514_s12  }
  0x36   :  { %s1515_s25 = smov [#allocation14]   ;;  %s1516_s27 = smov [#allocation2]  }
  0x37   :  { %s102_s26 = sshll.u32 %s1515_s25, 4  ;;  %s25_s28 = sshll.u32 %s1516_s27, 4  ;;  %s103_s26 = int_to_ptr.vmem [resolvable:$true] %s102_s26  ;;  %s26_s28 = int_to_ptr.vmem [resolvable:$true] %s25_s28 }
  0x38   :  { %s1344_s11 = scalar_lea.hbm %s1881_s7, 16 }
  0x39   :  { %p1345_p10 = scmp.ne.s32.totalorder %s1881_s7, %s1344_s11  ;;  %p1348_p11 = scmp.lt.u32.totalorder %s1344_s11, %s1881_s7 }
  0x3b   :  { %p1350_p12 = pnand %p1348_p11, %p1345_p10 }
  0x3d   :  { %1353 = shalt.err (!%p1350_p12)
}
  0x3e   :  { %s1354_s5 = scalar_lea.vmem %s103_s26, 16  ;;  %s1358_s24 = scalar_lea.vmem %s103_s26, 32 }
  0x3f   :  { %p1355_p13 = scmp.ne.s32.totalorder %s103_s26, %s1354_s5  ;;  %p1359_p0 = scmp.lt.s32.totalorder %s103_s26, %s103_s26 }
  0x40   :  { %p1360_p1 = scmp.lt.s32.totalorder %s1358_s24, %s1354_s5 }
  0x42   :  { %p1361_p2 = por %p1360_p1, %p1359_p0 }
  0x44   :  { %p1362_p3 = pnand %p1361_p2, %p1355_p13 }
  0x46   :  { %1365 = shalt.err (!%p1362_p3)
}
  0x47   :  { %105 = dma.hbm_to_vmem [thread:$0]  %s1881_s7, 16, %s103_s26, [#allocation15]  }
  0x48   :  { %s1366_s20 = scalar_lea.hbm %s1874_s0, 1024 }
  0x49   :  { %p1367_p4 = scmp.ne.s32.totalorder %s1874_s0, %s1366_s20  ;;  %p1370_p5 = scmp.lt.u32.totalorder %s1366_s20, %s1874_s0 }
  0x4b   :  { %p1372_p6 = pnand %p1370_p5, %p1367_p4 }
  0x4d   :  { %1375 = shalt.err (!%p1372_p6)
}
  0x4e   :  { %s1376_s25 = scalar_lea.vmem %s26_s28, 1024  ;;  %p1381_p8 = scmp.lt.s32.totalorder %s26_s28, %s26_s28 }
  0x4f   :  { %p1377_p7 = scmp.ne.s32.totalorder %s26_s28, %s1376_s25  ;;  %p1382_p9 = scmp.lt.s32.totalorder %s1376_s25, %s1376_s25 }
  0x51   :  { %p1383_p10 = por %p1382_p9, %p1381_p8 }
  0x53   :  { %p1384_p11 = pnand %p1383_p10, %p1377_p7 }
  0x55   :  { %1387 = shalt.err (!%p1384_p11)
}
  0x56   :  { %31 = dma.hbm_to_vmem [thread:$0]  %s1874_s0, 1024, %s26_s28, [#allocation3], %s1513_s10, %s1513_s10, %s1514_s12  }
  0x57   :  { %s1517_s27 = smov [#allocation7]   ;;  %s1518_s30 = smov [#allocation10]  }
  0x58   :  { %s48_s29 = sshll.u32 %s1517_s27, 4  ;;  %s70_s11 = sshll.u32 %s1518_s30, 4  ;;  %s49_s29 = int_to_ptr.vmem [resolvable:$true] %s48_s29  ;;  %s71_s11 = int_to_ptr.vmem [resolvable:$true] %s70_s11 }
  0x59   :  { %s1388_s14 = scalar_lea.hbm %s1876_s2, 16 }
  0x5a   :  { %p1389_p12 = scmp.ne.s32.totalorder %s1876_s2, %s1388_s14  ;;  %p1392_p13 = scmp.lt.u32.totalorder %s1388_s14, %s1876_s2 }
  0x5c   :  { %p1394_p0 = pnand %p1392_p13, %p1389_p12 }
  0x5e   :  { %1397 = shalt.err (!%p1394_p0)
}
  0x5f   :  { %s1398_s0 = scalar_lea.vmem %s49_s29, 16  ;;  %s1402_s10 = scalar_lea.vmem %s49_s29, 32 }
  0x60   :  { %p1399_p1 = scmp.ne.s32.totalorder %s49_s29, %s1398_s0  ;;  %p1403_p2 = scmp.lt.s32.totalorder %s49_s29, %s49_s29 }
  0x61   :  { %p1404_p3 = scmp.lt.s32.totalorder %s1402_s10, %s1398_s0 }
  0x63   :  { %p1405_p4 = por %p1404_p3, %p1403_p2 }
  0x65   :  { %p1406_p5 = pnand %p1405_p4, %p1399_p1 }
  0x67   :  { %1409 = shalt.err (!%p1406_p5)
}
  0x68   :  { %51 = dma.hbm_to_vmem [thread:$0]  %s1876_s2, 16, %s49_s29, [#allocation6]  }
  0x69   :  { %s1410_s19 = scalar_lea.hbm %s1878_s4, 16 }
  0x6a   :  { %p1411_p6 = scmp.ne.s32.totalorder %s1878_s4, %s1410_s19  ;;  %p1414_p7 = scmp.lt.u32.totalorder %s1410_s19, %s1878_s4 }
  0x6c   :  { %p1416_p8 = pnand %p1414_p7, %p1411_p6 }
  0x6e   :  { %1419 = shalt.err (!%p1416_p8)
}
  0x6f   :  { %s1420_s22 = scalar_lea.vmem %s71_s11, 16  ;;  %s1424_s25 = scalar_lea.vmem %s71_s11, 32 }
  0x70   :  { %p1421_p9 = scmp.ne.s32.totalorder %s71_s11, %s1420_s22  ;;  %p1425_p10 = scmp.lt.s32.totalorder %s71_s11, %s71_s11 }
  0x71   :  { %p1426_p11 = scmp.lt.s32.totalorder %s1424_s25, %s1420_s22 }
  0x73   :  { %p1427_p12 = por %p1426_p11, %p1425_p10 }
  0x75   :  { %p1428_p13 = pnand %p1427_p12, %p1421_p9 }
  0x77   :  { %1431 = shalt.err (!%p1428_p13)
}
  0x78   :  { %73 = dma.hbm_to_vmem [thread:$0]  %s1878_s4, 16, %s71_s11, [#allocation9]  }
  0x79   :  { %s1519_s26 = smov [#allocation13]   ;;  %s1520_s29 = smov [#allocation16]  }
  0x7a   :  { %s92_s27 = sshll.u32 %s1519_s26, 4  ;;  %s112_s30 = sshll.u32 %s1520_s29, 4  ;;  %s93_s27 = int_to_ptr.vmem [resolvable:$true] %s92_s27  ;;  %s113_s30 = int_to_ptr.vmem [resolvable:$true] %s112_s30 }
  0x7b   :  { %s1432_s14 = scalar_lea.hbm %s1880_s6, 16 }
  0x7c   :  { %p1433_p0 = scmp.ne.s32.totalorder %s1880_s6, %s1432_s14  ;;  %p1436_p1 = scmp.lt.u32.totalorder %s1432_s14, %s1880_s6 }
  0x7e   :  { %p1438_p2 = pnand %p1436_p1, %p1433_p0 }
  0x80   :  { %1441 = shalt.err (!%p1438_p2)
}
  0x81   :  { %s1442_s4 = scalar_lea.vmem %s93_s27, 16  ;;  %s1446_s11 = scalar_lea.vmem %s93_s27, 32 }
  0x82   :  { %p1443_p3 = scmp.ne.s32.totalorder %s93_s27, %s1442_s4  ;;  %p1447_p4 = scmp.lt.s32.totalorder %s93_s27, %s93_s27 }
  0x83   :  { %p1448_p5 = scmp.lt.s32.totalorder %s1446_s11, %s1442_s4 }
  0x85   :  { %p1449_p6 = por %p1448_p5, %p1447_p4 }
  0x87   :  { %p1450_p7 = pnand %p1449_p6, %p1443_p3 }
  0x89   :  { %1453 = shalt.err (!%p1450_p7)
}
  0x8a   :  { %95 = dma.hbm_to_vmem [thread:$0]  %s1880_s6, 16, %s93_s27, [#allocation12]  }
  0x8b   :  { %s1454_s17 = scalar_lea.hbm %s1882_s8, 16 }
  0x8c   :  { %p1455_p8 = scmp.ne.s32.totalorder %s1882_s8, %s1454_s17  ;;  %p1458_p9 = scmp.lt.u32.totalorder %s1454_s17, %s1882_s8 }
  0x8e   :  { %p1460_p10 = pnand %p1458_p9, %p1455_p8 }
  0x90   :  { %1463 = shalt.err (!%p1460_p10)
}
  0x91   :  { %s1464_s23 = scalar_lea.vmem %s113_s30, 16  ;;  %s1468_s3 = scalar_lea.vmem %s113_s30, 32 }
  0x92   :  { %p1465_p11 = scmp.ne.s32.totalorder %s113_s30, %s1464_s23  ;;  %p1469_p12 = scmp.lt.s32.totalorder %s113_s30, %s113_s30 }
  0x93   :  { %p1470_p13 = scmp.lt.s32.totalorder %s1468_s3, %s1464_s23 }
  0x95   :  { %p1471_p0 = por %p1470_p13, %p1469_p12 }
  0x97   :  { %p1472_p1 = pnand %p1471_p0, %p1465_p11 }
  0x99   :  { %1475 = shalt.err (!%p1472_p1)
}
  0x9a   :  { %115 = dma.hbm_to_vmem [thread:$0]  %s1882_s8, 16, %s113_s30, [#allocation15]  }
  0x9b   :  { %1498 = dma.done.wait [#allocation3], 1024  }
  0x9c   :  { %1499 = vsyncadd [#allocation3], 4294966272 }
  0x9d   :  { %1500 = dma.done.wait [#allocation6], 80  }
  0x9e   :  { %1501 = vsyncadd [#allocation6], 4294967216 }
  0x9f   :  { %1502 = dma.done.wait [#allocation9], 1040  }
  0xa0   :  { %1503 = vsyncadd [#allocation9], 4294966256 }
  0xa1   :  { %1504 = dma.done.wait [#allocation12], 1040  }
  0xa2   :  { %1505 = vsyncadd [#allocation12], 4294966256 }
  0xa3   :  { %1506 = dma.done.wait [#allocation15], 32  }
  0xa4   :  { %1507 = vsyncadd [#allocation15], 4294967264  ;;  %vm233_vm0 = vcmask 1043456   ;;  %vm208_vm1 = vcmask 64512   ;;  %v160_v0 = vld [vmem:[#allocation5] sm:$0xf] }
  0xa5   :  { %1175 = vmatprep.subr.msk.bf16.mxu0 %vm233_vm0, %v160_v0  ;;  %v235_v1 = vsel %vm233_vm0, %v160_v0, 0  ;;  %v1190_v2 = vld [vmem:[#allocation2] sm:$0xff]   ;;  %v1191_v3 = vld [vmem:[#allocation2 + $0x8] sm:$0xff]   ;;  %v1192_v4 = vld [vmem:[#allocation2 + $0x10] sm:$0xff]   ;;  %s1521_s8 = smov [#allocation17]  }
  0xa6   :  { %1094 = vmatpush3.bf16.msra.mxu0 %v235_v1  ;;  %1095 = vmatprep.mubr.msk.bf16.mxu0 %vm208_vm1, %v1190_v2  ;;  %v1193_v5 = vld [vmem:[#allocation2 + $0x18] sm:$0xff]   ;;  %v1194_v6 = vld [vmem:[#allocation2 + $0x20] sm:$0xff]   ;;  %v1199_v8 = vld [vmem:[#allocation8 + $0x8] sm:$0xff]   ;;  %s969_s25 = sshll.u32 %s1521_s8, 4  ;;  %s970_s25 = int_to_ptr.vmem [resolvable:$true] %s969_s25 }
  0xa7   :  { %v1198_v7 = vld [vmem:[#allocation8] sm:$0xff]   ;;  %v1200_v9 = vld [vmem:[#allocation8 + $0x10] sm:$0xff]   ;;  %v1201_v11 = vld [vmem:[#allocation8 + $0x18] sm:$0xff]   ;;  %s1476_s2 = scalar_lea.vmem %s970_s25, 2048  ;;  %p1481_p3 = scmp.lt.s32.totalorder %s970_s25, %s970_s25 }
  0xa8   :  { %1111 = vmatprep.subr.bf16.mxu1 %v1198_v7  ;;  %v1195_v10 = vld [vmem:[#allocation2 + $0x28] sm:$0xff]   ;;  %v1196_v12 = vld [vmem:[#allocation2 + $0x30] sm:$0xff]   ;;  %v1197_v14 = vld [vmem:[#allocation2 + $0x38] sm:$0xff]   ;;  %p1477_p2 = scmp.ne.s32.totalorder %s970_s25, %s1476_s2  ;;  %p1482_p4 = scmp.lt.s32.totalorder %s1476_s2, %s1476_s2 }
  0xa9   :  { %1096 = vmatmul.mubr.msk.bf16.vlgmr.msra.gmra.mrb[0].mxu0 %vm208_vm1, %v1191_v3  ;;  %1112 = vmatpush3.bf16.msra.mxu1 %v1198_v7  ;;  %v1202_v13 = vld [vmem:[#allocation8 + $0x20] sm:$0xff]   ;;  %v1203_v15 = vld [vmem:[#allocation8 + $0x28] sm:$0xff]   ;;  %v1204_v16 = vld [vmem:[#allocation8 + $0x30] sm:$0xff]  }
  0xaa   :  { %1099 = vmatprep.mubr.msk.bf16.mxu0 %vm208_vm1, %v1192_v4  ;;  %1113 = vmatprep.subr.bf16.mxu1 %v1199_v8  ;;  %v1205_v17 = vld [vmem:[#allocation8 + $0x38] sm:$0xff]   ;;  %v1206_v18 = vld [vmem:[#allocation11] sm:$0xff]   ;;  %v1207_v19 = vld [vmem:[#allocation11 + $0x8] sm:$0xff]   ;;  %p1483_p5 = por %p1482_p4, %p1481_p3 }
  0xab   :  { %1143 = vmatprep.subr.bf16.mxu0 %v1206_v18  ;;  %v1208_v20 = vld [vmem:[#allocation11 + $0x10] sm:$0xff]   ;;  %v1209_v21 = vld [vmem:[#allocation11 + $0x18] sm:$0xff]   ;;  %v1210_v22 = vld [vmem:[#allocation11 + $0x20] sm:$0xff]  }
  0xac   :  { %1144 = vmatpush3.bf16.msra.mxu0 %v1206_v18  ;;  %v1211_v23 = vld [vmem:[#allocation11 + $0x28] sm:$0xff]   ;;  %v985_v25 = vld [vmem:[#allocation7] ss:$0 sm:$0xff]  ;;  %v1212_v1 = vld [vmem:[#allocation11 + $0x30] sm:$0xff]   ;;  %p1484_p6 = pnand %p1483_p5, %p1477_p2 }
  0xad   :  { %1114 = vmatpush3.bf16.msra.mxu1 %v1199_v8  ;;  %1145 = vmatprep.subr.bf16.mxu0 %v1207_v19  ;;  %v1213_v2 = vld [vmem:[#allocation11 + $0x38] sm:$0xff]  }
  0xae   :  { %1115 = vmatprep.subr.bf16.mxu1 %v1200_v9  ;;  %v1699_v3 = vld [vmem:[#allocation10] ss:$0 sm:$0xff] }
  0xb0   :  { %1146 = vmatpush3.bf16.msra.mxu0 %v1207_v19 }
  0xb1   :  { %1100 = vmatmul.mubr.msk.bf16.gmra.mrb[4].mxu0 %vm208_vm1, %v1193_v5  ;;  %1116 = vmatpush3.bf16.msra.mxu1 %v1200_v9 }
  0xb2   :  { %1103 = vmatprep.mubr.msk.bf16.mxu0 %vm208_vm1, %v1194_v6  ;;  %1117 = vmatprep.subr.bf16.mxu1 %v1201_v11 }
  0xb3   :  { %1147 = vmatprep.subr.bf16.mxu0 %v1208_v20 }
  0xb4   :  { %1148 = vmatpush3.bf16.msra.mxu0 %v1208_v20 }
  0xb5   :  { %1118 = vmatpush3.bf16.msra.mxu1 %v1201_v11  ;;  %1149 = vmatprep.subr.bf16.mxu0 %v1209_v21 }
  0xb6   :  { %1119 = vmatprep.subr.bf16.mxu1 %v1202_v13 }
  0xb8   :  { %1150 = vmatpush3.bf16.msra.mxu0 %v1209_v21 }
  0xb9   :  { %1104 = vmatmul.mubr.msk.bf16.gmra.mrb[8].mxu0 %vm208_vm1, %v1195_v10  ;;  %1120 = vmatpush3.bf16.msra.mxu1 %v1202_v13 }
  0xba   :  { %1107 = vmatprep.mubr.msk.bf16.mxu0 %vm208_vm1, %v1196_v12  ;;  %1121 = vmatprep.subr.bf16.mxu1 %v1203_v15 }
  0xbb   :  { %1151 = vmatprep.subr.bf16.mxu0 %v1210_v22 }
  0xbc   :  { %1152 = vmatpush3.bf16.msra.mxu0 %v1210_v22 }
  0xbd   :  { %1122 = vmatpush3.bf16.msra.mxu1 %v1203_v15  ;;  %1153 = vmatprep.subr.bf16.mxu0 %v1211_v23 }
  0xbe   :  { %1123 = vmatprep.subr.bf16.mxu1 %v1204_v16 }
  0xc0   :  { %1154 = vmatpush3.bf16.msra.mxu0 %v1211_v23 }
  0xc1   :  { %1108 = vmatmul.mubr.msk.bf16.gmra.mrb[12].mxu0 %vm208_vm1, %v1197_v14  ;;  %1124 = vmatpush3.bf16.msra.mxu1 %v1204_v16 }
  0xc2   :  { %1125 = vmatprep.subr.bf16.mxu1 %v1205_v17  ;;  %1155 = vmatprep.subr.bf16.mxu0 %v1212_v1 }
  0xc4   :  { %1156 = vmatpush3.bf16.msra.mxu0 %v1212_v1 }
  0xc5   :  { %1126 = vmatpush3.bf16.msra.mxu1 %v1205_v17  ;;  %1157 = vmatprep.subr.bf16.mxu0 %v1213_v2 }
  0xc8   :  { %1158 = vmatpush3.bf16.msra.mxu0 %v1213_v2 }
 0x17c   :  { %v1097_v24 = vpop.f32.mrb[0].mxu0 }
 0x17d   :  { %v271_v26 = vpop.f32.mrb[1].mxu0  ;;  %v280_v28 = vadd.f32 %v1097_v24, %v985_v25 }
 0x17e   :  { %v1098_v27 = vpop.f32.mrb[2].mxu0  ;;  %v272_v31 = vadd.f32 %v985_v25, %v271_v26 }
 0x17f   :  { %v283_v29 = vadd.f32 %v1098_v27, %v985_v25  ;;  %v274_v30 = vpop.f32.mrb[3].mxu0 }
 0x180   :  { %v275_v32 = vadd.f32 %v985_v25, %v274_v30 }
 0x181   :  { %v335_v33 = vpack.c.bf16 %v283_v29, %v280_v28 }
 0x182   :  { %v334_v34 = vpack.c.bf16 %v275_v32, %v272_v31 }
 0x184   :  { %v1101_v35 = vpop.f32.mrb[4].mxu0  ;;  %1127 = vmatprep.mubr.bf16.mxu1 %v334_v34 }
 0x185   :  { %v287_v36 = vpop.f32.mrb[5].mxu0  ;;  %1128 = vmatmul.mubr.bf16.vlgmr.msra.gmra.mrb[0].mxu1 %v335_v33  ;;  %v296_v38 = vadd.f32 %v1101_v35, %v985_v25 }
 0x186   :  { %v1102_v37 = vpop.f32.mrb[6].mxu0  ;;  %v288_v41 = vadd.f32 %v985_v25, %v287_v36 }
 0x187   :  { %v299_v39 = vadd.f32 %v1102_v37, %v985_v25  ;;  %v290_v40 = vpop.f32.mrb[7].mxu0 }
 0x188   :  { %v291_v42 = vadd.f32 %v985_v25, %v290_v40 }
 0x189   :  { %v337_v43 = vpack.c.bf16 %v299_v39, %v296_v38 }
 0x18a   :  { %v336_v44 = vpack.c.bf16 %v291_v42, %v288_v41 }
 0x18c   :  { %v1105_v45 = vpop.f32.mrb[8].mxu0  ;;  %1131 = vmatprep.mubr.bf16.mxu1 %v336_v44 }
 0x18d   :  { %v303_v46 = vpop.f32.mrb[9].mxu0  ;;  %1132 = vmatmul.mubr.bf16.gmra.mrb[4].mxu1 %v337_v43  ;;  %v312_v48 = vadd.f32 %v1105_v45, %v985_v25 }
 0x18e   :  { %v1106_v47 = vpop.f32.mrb[10].mxu0  ;;  %v304_v51 = vadd.f32 %v985_v25, %v303_v46 }
 0x18f   :  { %v315_v49 = vadd.f32 %v1106_v47, %v985_v25  ;;  %v306_v50 = vpop.f32.mrb[11].mxu0 }
 0x190   :  { %v307_v52 = vadd.f32 %v985_v25, %v306_v50 }
 0x191   :  { %v339_v53 = vpack.c.bf16 %v315_v49, %v312_v48 }
 0x192   :  { %v338_v54 = vpack.c.bf16 %v307_v52, %v304_v51 }
 0x194   :  { %v1109_v55 = vpop.f32.mrb[12].mxu0  ;;  %1135 = vmatprep.mubr.bf16.mxu1 %v338_v54 }
 0x195   :  { %v319_v56 = vpop.f32.mrb[13].mxu0  ;;  %1136 = vmatmul.mubr.bf16.gmra.mrb[8].mxu1 %v339_v53  ;;  %v328_v58 = vadd.f32 %v1109_v55, %v985_v25 }
 0x196   :  { %v1110_v57 = vpop.f32.mrb[14].mxu0  ;;  %v320_v61 = vadd.f32 %v985_v25, %v319_v56 }
 0x197   :  { %v331_v59 = vadd.f32 %v1110_v57, %v985_v25  ;;  %v322_v60 = vpop.f32.mrb[15].mxu0 }
 0x198   :  { %v323_v62 = vadd.f32 %v985_v25, %v322_v60 }
 0x199   :  { %v341_v63 = vpack.c.bf16 %v331_v59, %v328_v58 }
 0x19a   :  { %v340_v0 = vpack.c.bf16 %v323_v62, %v320_v61 }
 0x19c   :  { %1139 = vmatprep.mubr.bf16.mxu1 %v340_v0 }
 0x19d   :  { %1140 = vmatmul.mubr.bf16.gmra.mrb[12].mxu1 %v341_v63 }
 0x258   :  { %v1129_v4 = vpop.f32.mrb[0].mxu1 }
 0x259   :  { %v456_v5 = vadd.f32 %v1129_v4, %v1699_v3  ;;  %v447_v6 = vpop.f32.mrb[1].mxu1 }
 0x25a   :  { %v448_v7 = vadd.f32 %v1699_v3, %v447_v6  ;;  %v1130_v8 = vpop.f32.mrb[2].mxu1 }
 0x25b   :  { %v528_v9 = vmul.f32 0.01, %v456_v5  ;;  %v459_v10 = vadd.f32 %v1130_v8, %v1699_v3  ;;  %v450_v11 = vpop.f32.mrb[3].mxu1  ;;  %vm512_vm2 = vcmp.ge.f32.partialorder %v456_v5, 0.0 }
 0x25c   :  { %v526_v12 = vmul.f32 0.01, %v448_v7  ;;  %v451_v13 = vadd.f32 %v1699_v3, %v450_v11  ;;  %vm510_vm3 = vcmp.ge.f32.partialorder %v448_v7, 0.0 }
 0x25d   :  { %vm513_vm4 = vcmp.ge.f32.partialorder %v459_v10, 0.0  ;;  %v529_v14 = vmul.f32 0.01, %v459_v10  ;;  %v544_v16 = vsel %vm512_vm2, %v456_v5, %v528_v9 }
 0x25e   :  { %vm511_vm5 = vcmp.ge.f32.partialorder %v451_v13, 0.0  ;;  %v527_v15 = vmul.f32 0.01, %v451_v13  ;;  %v542_v20 = vsel %vm510_vm3, %v448_v7, %v526_v12 }
 0x25f   :  { %v545_v17 = vsel %vm513_vm4, %v459_v10, %v529_v14 }
 0x260   :  { %v559_v18 = vpack.c.bf16 %v545_v17, %v544_v16  ;;  %v1133_v19 = vpop.f32.mrb[4].mxu1  ;;  %v543_v21 = vsel %vm511_vm5, %v451_v13, %v527_v15  ;;  %v1717_v13 = vld [vmem:[#allocation13] ss:$0 sm:$0xff] }
 0x261   :  { %v472_v22 = vadd.f32 %v1133_v19, %v1699_v3  ;;  %v463_v23 = vpop.f32.mrb[5].mxu1  ;;  %v558_v24 = vpack.c.bf16 %v543_v21, %v542_v20 }
 0x262   :  { %v464_v25 = vadd.f32 %v1699_v3, %v463_v23  ;;  %v1134_v26 = vpop.f32.mrb[6].mxu1 }
 0x263   :  { %v532_v27 = vmul.f32 0.01, %v472_v22  ;;  %v475_v28 = vadd.f32 %v1134_v26, %v1699_v3  ;;  %v466_v29 = vpop.f32.mrb[7].mxu1  ;;  %1159 = vmatprep.mubr.bf16.mxu0 %v558_v24  ;;  %vm516_vm6 = vcmp.ge.f32.partialorder %v472_v22, 0.0 }
 0x264   :  { %v530_v30 = vmul.f32 0.01, %v464_v25  ;;  %v467_v31 = vadd.f32 %v1699_v3, %v466_v29  ;;  %1160 = vmatmul.mubr.bf16.vlgmr.msra.gmra.mrb[16].mxu0 %v559_v18  ;;  %vm514_vm7 = vcmp.ge.f32.partialorder %v464_v25, 0.0 }
 0x265   :  { %vm517_vm8 = vcmp.ge.f32.partialorder %v475_v28, 0.0  ;;  %v533_v32 = vmul.f32 0.01, %v475_v28  ;;  %v548_v34 = vsel %vm516_vm6, %v472_v22, %v532_v27  ;;  %v830_v27 = vld [vmem:[#allocation14] sm:$0x1] }
 0x266   :  { %vm515_vm9 = vcmp.ge.f32.partialorder %v467_v31, 0.0  ;;  %v531_v33 = vmul.f32 0.01, %v467_v31  ;;  %v546_v37 = vsel %vm514_vm7, %v464_v25, %v530_v30  ;;  %v835_v25 = vlaneseq }
 0x267   :  { %v549_v35 = vsel %vm517_vm8, %v475_v28, %v533_v32 }
 0x268   :  { %v1137_v36 = vpop.f32.mrb[8].mxu1  ;;  %v547_v38 = vsel %vm515_vm9, %v467_v31, %v531_v33  ;;  %v561_v39 = vpack.c.bf16 %v549_v35, %v548_v34  ;;  %v832_v35 = vsub.f32 1.0, %v830_v27 }
 0x269   :  { %v488_v40 = vadd.f32 %v1137_v36, %v1699_v3  ;;  %v479_v41 = vpop.f32.mrb[9].mxu1  ;;  %v560_v42 = vpack.c.bf16 %v547_v38, %v546_v37  ;;  %v836_v36 = vshrl.u32 %v835_v25, 7 }
 0x26a   :  { %v480_v43 = vadd.f32 %v1699_v3, %v479_v41  ;;  %v1138_v44 = vpop.f32.mrb[10].mxu1 }
 0x26b   :  { %v536_v45 = vmul.f32 0.01, %v488_v40  ;;  %v491_v46 = vadd.f32 %v1138_v44, %v1699_v3  ;;  %v482_v47 = vpop.f32.mrb[11].mxu1  ;;  %1163 = vmatprep.mubr.bf16.mxu0 %v560_v42  ;;  %vm520_vm10 = vcmp.ge.f32.partialorder %v488_v40, 0.0 }
 0x26c   :  { %v534_v48 = vmul.f32 0.01, %v480_v43  ;;  %v483_v49 = vadd.f32 %v1699_v3, %v482_v47  ;;  %1164 = vmatmul.mubr.bf16.gmra.mrb[20].mxu0 %v561_v39  ;;  %vm518_vm11 = vcmp.ge.f32.partialorder %v480_v43, 0.0  ;;  %v831_v39 = vld [vmem:[#allocation16] sm:$0x1] }
 0x26d   :  { %vm521_vm12 = vcmp.ge.f32.partialorder %v491_v46, 0.0  ;;  %v537_v50 = vmul.f32 0.01, %v491_v46  ;;  %v552_v52 = vsel %vm520_vm10, %v488_v40, %v536_v45  ;;  %v833_v45 = vsub.f32 %v832_v35, %v831_v39 }
 0x26e   :  { %vm519_vm13 = vcmp.ge.f32.partialorder %v483_v49, 0.0  ;;  %v535_v51 = vmul.f32 0.01, %v483_v49  ;;  %v550_v55 = vsel %vm518_vm11, %v480_v43, %v534_v48 }
 0x26f   :  { %v553_v53 = vsel %vm521_vm12, %v491_v46, %v537_v50  ;;  %v837_v46 = vsub.s32 0, %v836_v36 }
 0x270   :  { %v1141_v54 = vpop.f32.mrb[12].mxu1  ;;  %v551_v56 = vsel %vm519_vm13, %v483_v49, %v535_v51  ;;  %v563_v57 = vpack.c.bf16 %v553_v53, %v552_v52 }
 0x271   :  { %v504_v58 = vadd.f32 %v1141_v54, %v1699_v3  ;;  %v495_v59 = vpop.f32.mrb[13].mxu1  ;;  %v562_v60 = vpack.c.bf16 %v551_v56, %v550_v55 }
 0x272   :  { %v496_v61 = vadd.f32 %v1699_v3, %v495_v59  ;;  %v1142_v62 = vpop.f32.mrb[14].mxu1  ;;  %v1758_v59 = vrot.slane %v833_v45, %v837_v46 }
 0x273   :  { %v540_v63 = vmul.f32 0.01, %v504_v58  ;;  %v507_v0 = vadd.f32 %v1142_v62, %v1699_v3  ;;  %v498_v1 = vpop.f32.mrb[15].mxu1  ;;  %1167 = vmatprep.mubr.bf16.mxu0 %v562_v60  ;;  %vm524_vm14 = vcmp.ge.f32.partialorder %v504_v58, 0.0 }
 0x274   :  { %v538_v2 = vmul.f32 0.01, %v496_v61  ;;  %v499_v4 = vadd.f32 %v1699_v3, %v498_v1  ;;  %1168 = vmatmul.mubr.bf16.gmra.mrb[24].mxu0 %v563_v57  ;;  %vm522_vm15 = vcmp.ge.f32.partialorder %v496_v61, 0.0  ;;  %v1768_v1 = vrot.slane %v830_v27, %v837_v46 }
 0x275   :  { %vm525_vm0 = vcmp.ge.f32.partialorder %v507_v0, 0.0  ;;  %v541_v5 = vmul.f32 0.01, %v507_v0  ;;  %v556_v7 = vsel %vm524_vm14, %v504_v58, %v540_v63 }
 0x276   :  { %vm523_vm1 = vcmp.ge.f32.partialorder %v499_v4, 0.0  ;;  %v539_v6 = vmul.f32 0.01, %v499_v4  ;;  %v554_v9 = vsel %vm522_vm15, %v496_v61, %v538_v2 }
 0x277   :  { %v557_v8 = vsel %vm525_vm0, %v507_v0, %v541_v5 }
 0x278   :  { %v555_v10 = vsel %vm523_vm1, %v499_v4, %v539_v6  ;;  %v565_v11 = vpack.c.bf16 %v557_v8, %v556_v7  ;;  %v1773_v6 = vrot.slane %v831_v39, %v837_v46 }
 0x279   :  { %v564_v12 = vpack.c.bf16 %v555_v10, %v554_v9 }
 0x27b   :  { %1171 = vmatprep.mubr.bf16.mxu0 %v564_v12 }
 0x27c   :  { %1172 = vmatmul.mubr.bf16.gmra.mrb[28].mxu0 %v565_v11 }
 0x337   :  { %v1161_v14 = vpop.f32.mrb[16].mxu0 }
 0x338   :  { %v1720_v15 = vadd.f32 %v1161_v14, %v1717_v13  ;;  %v671_v3 = vpop.f32.mrb[17].mxu0 }
 0x339   :  { %v1723_v16 = vadd.f32 %v1717_v13, %v671_v3  ;;  %v1162_v17 = vpop.f32.mrb[18].mxu0 }
 0x33a   :  { %v1022_v18 = vmul.f32 -1.442695, %v1720_v15  ;;  %v1727_v19 = vadd.f32 %v1162_v17, %v1717_v13  ;;  %v674_v20 = vpop.f32.mrb[19].mxu0  ;;  %v842_v5 = vmul.f32 %v1758_v59, %v1720_v15 }
 0x33b   :  { %v1020_v21 = vmul.f32 -1.442695, %v1723_v16  ;;  %v1731_v22 = vadd.f32 %v1717_v13, %v674_v20  ;;  %v840_v10 = vmul.f32 %v1758_v59, %v1723_v16 }
 0x33c   :  { %1214 = vpow2.f32 %v1022_v18  ;;  %v1023_v23 = vmul.f32 -1.442695, %v1727_v19  ;;  %v843_v17 = vmul.f32 %v1758_v59, %v1727_v19 }
 0x33d   :  { %1216 = vpow2.f32 %v1020_v21  ;;  %v1021_v24 = vmul.f32 -1.442695, %v1731_v22  ;;  %v841_v15 = vmul.f32 %v1758_v59, %v1731_v22 }
 0x33e   :  { %1218 = vpow2.f32 %v1023_v23 }
 0x33f   :  { %1220 = vpow2.f32 %v1021_v24  ;;  %v1165_v26 = vpop.f32.mrb[20].mxu0 }
 0x340   :  { %v1736_v28 = vadd.f32 %v1165_v26, %v1717_v13  ;;  %v687_v29 = vpop.f32.mrb[21].mxu0 }
 0x341   :  { %v1739_v30 = vadd.f32 %v1717_v13, %v687_v29  ;;  %v1166_v31 = vpop.f32.mrb[22].mxu0 }
 0x342   :  { %v1026_v32 = vmul.f32 -1.442695, %v1736_v28  ;;  %v1743_v33 = vadd.f32 %v1166_v31, %v1717_v13  ;;  %v690_v34 = vpop.f32.mrb[23].mxu0  ;;  %v1786_v21 = vmul.f32 %v1758_v59, %v1736_v28 }
 0x343   :  { %v1024_v37 = vmul.f32 -1.442695, %v1739_v30  ;;  %v1747_v38 = vadd.f32 %v1717_v13, %v690_v34  ;;  %v1791_v26 = vmul.f32 %v1758_v59, %v1739_v30 }
 0x344   :  { %1222 = vpow2.f32 %v1026_v32  ;;  %v1027_v40 = vmul.f32 -1.442695, %v1743_v33  ;;  %v1795_v19 = vmul.f32 %v1758_v59, %v1743_v33 }
 0x345   :  { %1224 = vpow2.f32 %v1024_v37  ;;  %v1025_v41 = vmul.f32 -1.442695, %v1747_v38 }
 0x346   :  { %v1215_v42 = vpop.eup %1214  ;;  %1226 = vpow2.f32 %v1027_v40 }
 0x347   :  { %v1217_v43 = vpop.eup %1216  ;;  %v784_v44 = vadd.f32 1.0, %v1215_v42  ;;  %1228 = vpow2.f32 %v1025_v41  ;;  %v1169_v47 = vpop.f32.mrb[24].mxu0 }
 0x348   :  { %v1219_v48 = vpop.eup %1218  ;;  %v782_v49 = vadd.f32 1.0, %v1217_v43  ;;  %v1752_v50 = vadd.f32 %v1169_v47, %v1717_v13  ;;  %v703_v51 = vpop.f32.mrb[25].mxu0 }
 0x349   :  { %v1221_v52 = vpop.eup %1220  ;;  %1230 = vrcp.f32 %v784_v44  ;;  %v785_v53 = vadd.f32 1.0, %v1219_v48  ;;  %v1755_v54 = vadd.f32 %v1717_v13, %v703_v51  ;;  %v1170_v55 = vpop.f32.mrb[26].mxu0 }
 0x34a   :  { %1232 = vrcp.f32 %v782_v49  ;;  %v783_v56 = vadd.f32 1.0, %v1221_v52  ;;  %v1030_v57 = vmul.f32 -1.442695, %v1752_v50  ;;  %v706_v58 = vpop.f32.mrb[27].mxu0  ;;  %v1762_v61 = vadd.f32 %v1170_v55, %v1717_v13 }
 0x34b   :  { %1234 = vrcp.f32 %v785_v53  ;;  %v1028_v60 = vmul.f32 -1.442695, %v1755_v54  ;;  %v1765_v62 = vadd.f32 %v1717_v13, %v706_v58 }
 0x34c   :  { %1236 = vrcp.f32 %v783_v56  ;;  %v1031_v63 = vmul.f32 -1.442695, %v1762_v61 }
 0x34d   :  { %1238 = vpow2.f32 %v1030_v57  ;;  %v1029_v2 = vmul.f32 -1.442695, %v1765_v62 }
 0x34e   :  { %v1223_v0 = vpop.eup %1222  ;;  %1240 = vpow2.f32 %v1028_v60  ;;  %v845_v60 = vmul.f32 %v1758_v59, %v1747_v38 }
 0x34f   :  { %v1225_v4 = vpop.eup %1224  ;;  %v788_v7 = vadd.f32 1.0, %v1223_v0  ;;  %1242 = vpow2.f32 %v1031_v63  ;;  %v1173_v8 = vpop.f32.mrb[28].mxu0 }
 0x350   :  { %v1227_v9 = vpop.eup %1226  ;;  %v786_v11 = vadd.f32 1.0, %v1225_v4  ;;  %1244 = vpow2.f32 %v1029_v2  ;;  %v1778_v12 = vadd.f32 %v1173_v8, %v1717_v13  ;;  %v719_v14 = vpop.f32.mrb[29].mxu0 }
 0x351   :  { %v1229_v3 = vpop.eup %1228  ;;  %1246 = vrcp.f32 %v788_v7  ;;  %v789_v18 = vadd.f32 1.0, %v1227_v9  ;;  %v1174_v20 = vpop.f32.mrb[30].mxu0  ;;  %v1798_v22 = vadd.f32 %v1717_v13, %v719_v14 }
 0x352   :  { %1248 = vrcp.f32 %v786_v11  ;;  %v787_v16 = vadd.f32 1.0, %v1229_v3  ;;  %v1034_v23 = vmul.f32 -1.442695, %v1778_v12  ;;  %v722_v24 = vpop.f32.mrb[31].mxu0  ;;  %v1802_v31 = vadd.f32 %v1174_v20, %v1717_v13 }
 0x353   :  { %v1231_v25 = vpop.eup %1230  ;;  %1250 = vrcp.f32 %v789_v18  ;;  %v1806_v35 = vadd.f32 %v1717_v13, %v722_v24 }
 0x354   :  { %v1233_v27 = vpop.eup %1232  ;;  %v864_v28 = vmul.f32 %v1231_v25, %v1768_v1  ;;  %v1038_v29 = vadd.f32 -0.5, %v1231_v25  ;;  %1252 = vrcp.f32 %v787_v16 }
 0x355   :  { %v1235_v32 = vpop.eup %1234  ;;  %v862_v30 = vmul.f32 %v1233_v27, %v1768_v1  ;;  %v1036_v34 = vadd.f32 -0.5, %v1233_v27  ;;  %1254 = vpow2.f32 %v1034_v23  ;;  %v1033_v3 = vmul.f32 -1.442695, %v1806_v35 }
 0x356   :  { %v1237_v33 = vpop.eup %1236  ;;  %v880_v36 = vadd.f32 %v864_v28, %v842_v5  ;;  %v918_v37 = vmul.f32 %v1038_v29, %v1773_v6  ;;  %v865_v39 = vmul.f32 %v1235_v32, %v1768_v1  ;;  %v1039_v40 = vadd.f32 -0.5, %v1235_v32 }
 0x357   :  { %v1239_v41 = vpop.eup %1238  ;;  %v878_v42 = vadd.f32 %v862_v30, %v840_v10  ;;  %v916_v43 = vmul.f32 %v1036_v34, %v1773_v6  ;;  %v863_v44 = vmul.f32 %v1237_v33, %v1768_v1  ;;  %v1037_v45 = vadd.f32 -0.5, %v1237_v33 }
 0x358   :  { %v1241_v46 = vpop.eup %1240  ;;  %v934_v47 = vadd.f32 %v918_v37, %v880_v36  ;;  %v881_v48 = vadd.f32 %v865_v39, %v843_v17  ;;  %v919_v13 = vmul.f32 %v1039_v40, %v1773_v6  ;;  %v792_v49 = vadd.f32 1.0, %v1239_v41 }
 0x359   :  { %v1243_v51 = vpop.eup %1242  ;;  %v932_v52 = vadd.f32 %v916_v43, %v878_v42  ;;  %v879_v53 = vadd.f32 %v863_v44, %v841_v15  ;;  %v917_v55 = vmul.f32 %v1037_v45, %v1773_v6  ;;  %v790_v56 = vadd.f32 1.0, %v1241_v46 }
 0x35a   :  { %v1245_v57 = vpop.eup %1244  ;;  %950 = vst [vmem:[#allocation17 + $0x10] sm:$0xff] %v934_v47  ;;  %v935_v58 = vadd.f32 %v919_v13, %v881_v48  ;;  %1256 = vrcp.f32 %v792_v49  ;;  %v793_v63 = vadd.f32 1.0, %v1243_v51  ;;  %v1032_v5 = vmul.f32 -1.442695, %v1798_v22 }
 0x35b   :  { %v1247_v0 = vpop.eup %1246  ;;  %948 = vst [vmem:[#allocation17] sm:$0xff] %v932_v52  ;;  %v933_v2 = vadd.f32 %v917_v55, %v879_v53  ;;  %1258 = vrcp.f32 %v790_v56  ;;  %v791_v4 = vadd.f32 1.0, %v1245_v57  ;;  %v1035_v10 = vmul.f32 -1.442695, %v1802_v31 }
 0x35c   :  { %v1249_v7 = vpop.eup %1248  ;;  %951 = vst [vmem:[#allocation17 + $0x18] sm:$0xff] %v935_v58  ;;  %v868_v8 = vmul.f32 %v1247_v0, %v1768_v1  ;;  %v1042_v9 = vadd.f32 -0.5, %v1247_v0  ;;  %1260 = vrcp.f32 %v793_v63  ;;  %v848_v43 = vmul.f32 %v1758_v59, %v1755_v54 }
 0x35d   :  { %v1251_v11 = vpop.eup %1250  ;;  %949 = vst [vmem:[#allocation17 + $0x8] sm:$0xff] %v933_v2  ;;  %v866_v38 = vmul.f32 %v1249_v7, %v1768_v1  ;;  %v1040_v14 = vadd.f32 -0.5, %v1249_v7  ;;  %1262 = vrcp.f32 %v791_v4  ;;  %v851_v47 = vmul.f32 %v1758_v59, %v1762_v61 }
 0x35e   :  { %v1253_v17 = vpop.eup %1252  ;;  %v884_v15 = vadd.f32 %v868_v8, %v1786_v21  ;;  %v922_v18 = vmul.f32 %v1042_v9, %v1773_v6  ;;  %v869_v20 = vmul.f32 %v1251_v11, %v1768_v1  ;;  %v1043_v16 = vadd.f32 -0.5, %v1251_v11 }
 0x35f   :  { %v1255_v23 = vpop.eup %1254  ;;  %v882_v24 = vadd.f32 %v866_v38, %v1791_v26  ;;  %v920_v25 = vmul.f32 %v1040_v14, %v1773_v6  ;;  %v867_v27 = vmul.f32 %v1253_v17, %v1768_v1  ;;  %v1041_v28 = vadd.f32 -0.5, %v1253_v17 }
 0x360   :  { %v938_v29 = vadd.f32 %v922_v18, %v884_v15  ;;  %v885_v32 = vadd.f32 %v869_v20, %v1795_v19  ;;  %v923_v30 = vmul.f32 %v1043_v16, %v1773_v6  ;;  %v796_v34 = vadd.f32 1.0, %v1255_v23 }
 0x361   :  { %v936_v21 = vadd.f32 %v920_v25, %v882_v24  ;;  %v883_v33 = vadd.f32 %v867_v27, %v845_v60  ;;  %v921_v36 = vmul.f32 %v1041_v28, %v1773_v6  ;;  %1264 = vpow2.f32 %v1032_v5 }
 0x362   :  { %954 = vst [vmem:[#allocation17 + $0x30] sm:$0xff] %v938_v29  ;;  %v939_v37 = vadd.f32 %v923_v30, %v885_v32  ;;  %1266 = vrcp.f32 %v796_v34  ;;  %v850_v19 = vmul.f32 %v1758_v59, %v1752_v50  ;;  %v849_v48 = vmul.f32 %v1758_v59, %v1765_v62 }
 0x363   :  { %952 = vst [vmem:[#allocation17 + $0x20] sm:$0xff] %v936_v21  ;;  %v937_v26 = vadd.f32 %v921_v36, %v883_v33  ;;  %1268 = vpow2.f32 %v1035_v10  ;;  %v854_v9 = vmul.f32 %v1758_v59, %v1778_v12  ;;  %v852_v16 = vmul.f32 %v1758_v59, %v1798_v22 }
 0x364   :  { %v1257_v39 = vpop.eup %1256  ;;  %955 = vst [vmem:[#allocation17 + $0x38] sm:$0xff] %v939_v37  ;;  %1270 = vpow2.f32 %v1033_v3  ;;  %v855_v25 = vmul.f32 %v1758_v59, %v1802_v31  ;;  %v853_v34 = vmul.f32 %v1758_v59, %v1806_v35 }
 0x365   :  { %v1259_v40 = vpop.eup %1258  ;;  %953 = vst [vmem:[#allocation17 + $0x28] sm:$0xff] %v937_v26  ;;  %v872_v41 = vmul.f32 %v1257_v39, %v1768_v1  ;;  %v1046_v42 = vadd.f32 -0.5, %v1257_v39 }
 0x366   :  { %v1261_v44 = vpop.eup %1260  ;;  %v870_v45 = vmul.f32 %v1259_v40, %v1768_v1  ;;  %v1044_v46 = vadd.f32 -0.5, %v1259_v40 }
 0x367   :  { %v1263_v13 = vpop.eup %1262  ;;  %v888_v49 = vadd.f32 %v872_v41, %v850_v19  ;;  %v926_v50 = vmul.f32 %v1046_v42, %v1773_v6  ;;  %v873_v51 = vmul.f32 %v1261_v44, %v1768_v1  ;;  %v1047_v52 = vadd.f32 -0.5, %v1261_v44 }
 0x368   :  { %v886_v53 = vadd.f32 %v870_v45, %v848_v43  ;;  %v924_v54 = vmul.f32 %v1044_v46, %v1773_v6  ;;  %v871_v55 = vmul.f32 %v1263_v13, %v1768_v1  ;;  %v1045_v56 = vadd.f32 -0.5, %v1263_v13 }
 0x369   :  { %v942_v57 = vadd.f32 %v926_v50, %v888_v49  ;;  %v889_v58 = vadd.f32 %v873_v51, %v851_v47  ;;  %v927_v61 = vmul.f32 %v1047_v52, %v1773_v6 }
 0x36a   :  { %v940_v60 = vadd.f32 %v924_v54, %v886_v53  ;;  %v887_v63 = vadd.f32 %v871_v55, %v849_v48  ;;  %v925_v62 = vmul.f32 %v1045_v56, %v1773_v6 }
 0x36b   :  { %v1265_v0 = vpop.eup %1264  ;;  %958 = vst [vmem:[#allocation17 + $0x50] sm:$0xff] %v942_v57  ;;  %v943_v2 = vadd.f32 %v927_v61, %v889_v58 }
 0x36c   :  { %v1267_v4 = vpop.eup %1266  ;;  %956 = vst [vmem:[#allocation17 + $0x40] sm:$0xff] %v940_v60  ;;  %v941_v5 = vadd.f32 %v925_v62, %v887_v63  ;;  %v794_v7 = vadd.f32 1.0, %v1265_v0 }
 0x36d   :  { %v1269_v8 = vpop.eup %1268  ;;  %959 = vst [vmem:[#allocation17 + $0x58] sm:$0xff] %v943_v2  ;;  %v876_v10 = vmul.f32 %v1267_v4, %v1768_v1  ;;  %v1050_v11 = vadd.f32 -0.5, %v1267_v4 }
 0x36e   :  { %v1271_v38 = vpop.eup %1270  ;;  %957 = vst [vmem:[#allocation17 + $0x48] sm:$0xff] %v941_v5  ;;  %1272 = vrcp.f32 %v794_v7  ;;  %v797_v14 = vadd.f32 1.0, %v1269_v8 }
 0x36f   :  { %v892_v3 = vadd.f32 %v876_v10, %v854_v9  ;;  %v930_v17 = vmul.f32 %v1050_v11, %v1773_v6  ;;  %v795_v15 = vadd.f32 1.0, %v1271_v38 }
 0x370   :  { %1274 = vrcp.f32 %v797_v14 }
 0x371   :  { %v946_v18 = vadd.f32 %v930_v17, %v892_v3  ;;  %1276 = vrcp.f32 %v795_v15 }
 0x373   :  { %962 = vst [vmem:[#allocation17 + $0x70] sm:$0xff] %v946_v18 }
 0x378   :  { %v1273_v20 = vpop.eup %1272 }
 0x379   :  { %v874_v12 = vmul.f32 %v1273_v20, %v1768_v1  ;;  %v1048_v23 = vadd.f32 -0.5, %v1273_v20 }
 0x37a   :  { %v1275_v24 = vpop.eup %1274 }
 0x37b   :  { %v1277_v27 = vpop.eup %1276  ;;  %v890_v28 = vadd.f32 %v874_v12, %v852_v16  ;;  %v928_v29 = vmul.f32 %v1048_v23, %v1773_v6  ;;  %v877_v32 = vmul.f32 %v1275_v24, %v1768_v1  ;;  %v1051_v30 = vadd.f32 -0.5, %v1275_v24 }
 0x37c   :  { %v875_v21 = vmul.f32 %v1277_v27, %v1768_v1  ;;  %v1049_v22 = vadd.f32 -0.5, %v1277_v27 }
 0x37d   :  { %v944_v33 = vadd.f32 %v928_v29, %v890_v28  ;;  %v893_v36 = vadd.f32 %v877_v32, %v855_v25  ;;  %v931_v37 = vmul.f32 %v1051_v30, %v1773_v6 }
 0x37e   :  { %v891_v31 = vadd.f32 %v875_v21, %v853_v34  ;;  %v929_v26 = vmul.f32 %v1049_v22, %v1773_v6 }
 0x37f   :  { %960 = vst [vmem:[#allocation17 + $0x60] sm:$0xff] %v944_v33  ;;  %v947_v39 = vadd.f32 %v931_v37, %v893_v36 }
 0x380   :  { %v945_v40 = vadd.f32 %v929_v26, %v891_v31 }
 0x381   :  { %963 = vst [vmem:[#allocation17 + $0x78] sm:$0xff] %v947_v39 }
 0x382   :  { %961 = vst [vmem:[#allocation17 + $0x68] sm:$0xff] %v945_v40 }
 0x383   :  { %1487 = shalt.err (!%p1484_p6)
}
 0x384   :  { %s1488_s27 = scalar_lea.hbm %s1883_s9, 2048 }
 0x385   :  { %p1489_p7 = scmp.ne.s32.totalorder %s1883_s9, %s1488_s27  ;;  %p1492_p8 = scmp.lt.u32.totalorder %s1488_s27, %s1883_s9 }
 0x387   :  { %p1494_p9 = pnand %p1492_p8, %p1489_p7 }
 0x389   :  { %1497 = shalt.err (!%p1494_p9)
}
 0x38a   :  { %s1522_s14 = smov 128   ;;  %s1523_s15 = smov 8  }
 0x38b   :  { %975 = dma.vmem_to_hbm [thread:$0]  %s970_s25, 2048, %s1883_s9, [#allocation4], %s1522_s14, %s1522_s14, %s1523_s15  }
 0x38c   :  { %1508 = dma.done.wait [#allocation4], 2048  }
 0x38d   :  { %1509 = vsyncadd [#allocation4], 4294965248 }
 0x38e   :  { %979 = vsyncpa [#allocation3], 1 }
 0x38f   :  { %980 = vsyncpa [#allocation6], 1 }
 0x390   :  { %981 = vsyncpa [#allocation9], 1 }
 0x391   :  { %982 = vsyncpa [#allocation12], 1 }
 0x392   :  { %983 = vsyncpa [#allocation15], 1 }
 0x393   :  { %984 = vsyncpa [#allocation4], 1 }

</bundles_post_ra>
